<compile_context>
chip_gen: v7x
topology: tpu7x:2x2x1
jax: 0.10.0
libtpu: 0.0.40
codegen_flags: <defaults>
</compile_context>

<pallas_src>
import functools

import jax
import jax.numpy as jnp
from jax import lax
from jax.experimental import pallas as pl
from jax.experimental.pallas import tpu as pltpu


def _round_up(x, m):
    return (x + m - 1) // m * m


# -----------------------------------------------------------------------------
# Kernel A: per-edge messages.
#   gather raw src feats (MXU, mask built in-kernel) -> per-kernel gaussian
#   weight (VPU/EUP) + fc-on-edges (MXU) + fused K-pooling -> (TE, F_p) message.
# -----------------------------------------------------------------------------
def _edge_message_kernel(src_ref, u_ref, feat_ref, wfc_ref, mu_ref, isig2_ref,
                         msg_ref):
    f32 = jnp.float32
    te = src_ref.shape[0]          # edge tile
    n_src = feat_ref.shape[0]      # (padded) number of source nodes
    k = wfc_ref.shape[0]           # number of gaussian kernels
    f_p = msg_ref.shape[1]         # lane-padded out_feats

    # ---- gather raw source features for this edge tile (MXU) ----------------
    src_col = src_ref[...]                                            # (TE, 1) i32
    col_ids = lax.broadcasted_iota(jnp.int32, (te, n_src), 1)
    gather_1h = (col_ids == src_col).astype(f32)                      # (TE, N_src)
    x_e = jnp.dot(gather_1h, feat_ref[...],
                  preferred_element_type=f32)                         # (TE, D_in_p)

    # ---- gaussian weights (VPU/EUP) + fc-on-edges (MXU) + fused K-pool ------
    u = u_ref[...]                                                    # (TE, D)
    mu = mu_ref[...]                                                  # (K, D)
    isig2 = isig2_ref[...]                                            # (K, D)
    m_pooled = jnp.zeros((te, f_p), f32)
    for kk in range(k):                                               # K small & static
        diff = u - mu[kk:kk + 1, :]                                   # (TE, D)
        logit = jnp.sum(diff * diff * isig2[kk:kk + 1, :],
                        axis=-1, keepdims=True)                       # (TE, 1)
        w_k = jnp.exp(-0.5 * logit)                                   # EUP
        h_k = jnp.dot(x_e, wfc_ref[kk],
                      preferred_element_type=f32)                     # (TE, F_p)
        m_pooled = m_pooled + w_k * h_k

    msg_ref[...] = m_pooled


# -----------------------------------------------------------------------------
# Kernel B: scatter-sum of edge messages to destination nodes + bias.
#   Output block is VMEM-resident across the edge (reduction) grid axis.
# -----------------------------------------------------------------------------
def _scatter_sum_kernel(dst_ref, msg_ref, bias_ref, out_ref):
    f32 = jnp.float32
    tn = out_ref.shape[0]          # dst-node tile
    te = msg_ref.shape[0]          # edge tile
    e_step = pl.program_id(1)

    @pl.when(e_step == 0)
    def _init():
        out_ref[...] = jnp.zeros_like(out_ref)

    dst_row = dst_ref[...]                                            # (1, TE) i32
    row_ids = (lax.broadcasted_iota(jnp.int32, (tn, te), 0)
               + pl.program_id(0) * tn)
    scatter_1h = (row_ids == dst_row).astype(f32)                     # (TN, TE)
    out_ref[...] += jnp.dot(scatter_1h, msg_ref[...],
                            preferred_element_type=f32)

    @pl.when(e_step == pl.num_programs(1) - 1)
    def _finalize():
        out_ref[...] += bias_ref[...]                                 # (1, F_p) bcast


# -----------------------------------------------------------------------------
# Wrapper: padding / layout prep + two pallas_calls.
# -----------------------------------------------------------------------------
@functools.partial(jax.jit, static_argnames=("n_dst", "n_kernels", "out_feats"))
def gmmconv_forward(feat, pseudo, src, dst, fc_weight, mu, inv_sigma, bias,
                    *, n_dst, n_kernels, out_feats):
    n_src, d_in = feat.shape
    e, dim = pseudo.shape
    k, f = n_kernels, out_feats
    f32 = jnp.float32

    # ---- padded / tiled sizes ------------------------------------------------
    d_in_p = _round_up(d_in, 128)          # lane-pad fc contraction dim
    f_p = _round_up(f, 128)                # lane-pad output features (dense vst)
    n_src_p = _round_up(n_src, 8)
    te = 128 if e <= 128 else 256          # edge tile
    e_p = _round_up(e, te)
    tn = 256                               # dst-node tile (parallel axis)
    if n_dst <= tn:
        n_dst_p = _round_up(n_dst, 8)
        tn = n_dst_p
    else:
        n_dst_p = _round_up(n_dst, tn)

    # ---- operand prep (all padding is exact zeros / sentinels) --------------
    feat_p = jnp.zeros((n_src_p, d_in_p), f32).at[:n_src, :d_in].set(feat.astype(f32))
    pseudo_p = jnp.zeros((e_p, dim), f32).at[:e, :].set(pseudo.astype(f32))
    src_p = jnp.zeros((e_p, 1), jnp.int32).at[:e, 0].set(src.astype(jnp.int32))
    # padded edges get dst = -1 so they never match a node row -> contribute 0
    dst_p = jnp.full((1, e_p), -1, jnp.int32).at[0, :e].set(dst.astype(jnp.int32))

    # nn.Linear weight (K*F, D_in) -> per-kernel slabs (K, D_in_p, F_p)
    wfc = fc_weight.astype(f32).reshape(k, f, d_in).transpose(0, 2, 1)
    wfc_p = jnp.zeros((k, d_in_p, f_p), f32).at[:, :d_in, :f].set(wfc)

    mu_f = mu.astype(f32)                              # (K, D)
    isig2 = inv_sigma.astype(f32) ** 2                 # (K, D)
    bias_p = jnp.zeros((1, f_p), f32).at[0, :f].set(bias.astype(f32))

    e_tiles = e_p // te
    n_tiles = n_dst_p // tn

    # ---- Kernel A: per-edge messages (fully parallel over edge tiles) -------
    flops_a = 2 * e_p * n_src_p * d_in_p + 2 * e_p * d_in_p * k * f_p
    bytes_a = 4 * (n_src_p * d_in_p + k * d_in_p * f_p + e_p * dim
                   + e_p + 2 * k * dim + e_p * f_p)
    msg = pl.pallas_call(
        _edge_message_kernel,
        out_shape=jax.ShapeDtypeStruct((e_p, f_p), f32),
        grid=(e_tiles,),
        in_specs=[
            pl.BlockSpec((te, 1), lambda i: (i, 0)),               # src ids
            pl.BlockSpec((te, dim), lambda i: (i, 0)),             # pseudo coords
            pl.BlockSpec((n_src_p, d_in_p), lambda i: (0, 0)),     # feat (resident)
            pl.BlockSpec((k, d_in_p, f_p), lambda i: (0, 0, 0)),   # fc weight (resident)
            pl.BlockSpec((k, dim), lambda i: (0, 0)),              # mu (resident)
            pl.BlockSpec((k, dim), lambda i: (0, 0)),              # inv_sigma^2 (resident)
        ],
        out_specs=pl.BlockSpec((te, f_p), lambda i: (i, 0)),       # edge messages
        compiler_params=pltpu.CompilerParams(
            dimension_semantics=("parallel",),
            vmem_limit_bytes=48 * 1024 * 1024),
        cost_estimate=pl.CostEstimate(flops=flops_a,
                                      transcendentals=e_p * k,
                                      bytes_accessed=bytes_a),
    )(src_p, pseudo_p, feat_p, wfc_p, mu_f, isig2)

    # ---- Kernel B: scatter-sum to destination nodes + bias ------------------
    flops_b = 2 * n_dst_p * e_p * f_p
    bytes_b = 4 * (n_tiles * (e_p * f_p + e_p) + n_dst_p * f_p + f_p)
    out_p = pl.pallas_call(
        _scatter_sum_kernel,
        out_shape=jax.ShapeDtypeStruct((n_dst_p, f_p), f32),
        grid=(n_tiles, e_tiles),
        in_specs=[
            pl.BlockSpec((1, te), lambda n, i: (0, i)),            # dst ids
            pl.BlockSpec((te, f_p), lambda n, i: (i, 0)),          # edge messages
            pl.BlockSpec((1, f_p), lambda n, i: (0, 0)),           # bias (resident)
        ],
        out_specs=pl.BlockSpec((tn, f_p), lambda n, i: (n, 0)),    # accumulator block
        compiler_params=pltpu.CompilerParams(
            dimension_semantics=("parallel", "arbitrary"),
            vmem_limit_bytes=48 * 1024 * 1024),
        cost_estimate=pl.CostEstimate(flops=flops_b,
                                      transcendentals=0,
                                      bytes_accessed=bytes_b),
    )(dst_p, msg, bias_p)

    return out_p[:n_dst, :f]


# -----------------------------------------------------------------------------
# Pure-JAX reference (mirrors the PyTorch forward exactly, 'sum' aggregator).
# -----------------------------------------------------------------------------
def gmmconv_reference(feat, pseudo, src, dst, fc_weight, mu, inv_sigma, bias,
                      *, n_dst, n_kernels, out_feats):
    h = (feat @ fc_weight.T).reshape(-1, n_kernels, out_feats)     # (N, K, F)
    he = h[src]                                                    # (E, K, F)
    diff = pseudo[:, None, :] - mu[None, :, :]                     # (E, K, D)
    g = jnp.exp(jnp.sum(-0.5 * diff ** 2 * inv_sigma[None, :, :] ** 2, axis=-1))
    m = he * g[:, :, None]                                         # (E, K, F)
    agg = jnp.zeros((n_dst, n_kernels, out_feats), feat.dtype).at[dst].add(m)
    return agg.sum(axis=1) + bias


if __name__ == "__main__":
    # Small deterministic problem: homogeneous graph, N nodes, E edges.
    N = 8            # nodes (src == dst set, homogeneous graph)
    IN_FEATS = 16
    OUT_FEATS = 8
    DIM = 4          # pseudo-coordinate dimensionality
    K = 4            # number of gaussian kernels

    key = jax.random.PRNGKey(0)
    k_feat, k_u, k_src, k_dst, k_w, k_mu = jax.random.split(key, 6)

    # Graph: one self-loop per node (guarantees in-degree >= 1) + 8 random edges.
    rand_src = jax.random.randint(k_src, (8,), 0, N)
    rand_dst = jax.random.randint(k_dst, (8,), 0, N)
    src = jnp.concatenate([jnp.arange(N), rand_src]).astype(jnp.int32)
    dst = jnp.concatenate([jnp.arange(N), rand_dst]).astype(jnp.int32)
    E = src.shape[0]  # 16

    feat = jax.random.normal(k_feat, (N, IN_FEATS), jnp.float32)
    pseudo = jax.random.normal(k_u, (E, DIM), jnp.float32)

    # Parameters (deterministic, matching reset_parameters() distributions).
    gain = jnp.sqrt(2.0)  # relu gain
    xavier_std = gain * jnp.sqrt(2.0 / (IN_FEATS + K * OUT_FEATS))
    fc_weight = xavier_std * jax.random.normal(k_w, (K * OUT_FEATS, IN_FEATS), jnp.float32)
    mu = 0.1 * jax.random.normal(k_mu, (K, DIM), jnp.float32)
    inv_sigma = jnp.ones((K, DIM), jnp.float32)
    bias = jnp.zeros((OUT_FEATS,), jnp.float32)

    out = gmmconv_forward(feat, pseudo, src, dst, fc_weight, mu, inv_sigma, bias,
                          n_dst=N, n_kernels=K, out_feats=OUT_FEATS)
    out = jax.block_until_ready(out)

    ref = gmmconv_reference(feat, pseudo, src, dst, fc_weight, mu, inv_sigma, bias,
                            n_dst=N, n_kernels=K, out_feats=OUT_FEATS)

    assert out.shape == (N, OUT_FEATS)
    assert jnp.allclose(out, ref, atol=1e-3, rtol=1e-3), (
        f"mismatch: max abs err {jnp.max(jnp.abs(out - ref))}")
    print("KERNEL_OK")
</pallas_src>

<mosaic_0001>
module attributes {stable_mosaic.version = 11 : i64} {
  func.func @_edge_message_kernel(%arg0: i32, %arg1: memref<128x1xi32, #tpu.memory_space<vmem>>, %arg2: memref<128x4xf32, #tpu.memory_space<vmem>>, %arg3: memref<8x128xf32, #tpu.memory_space<vmem>>, %arg4: memref<4x128x128xf32, #tpu.memory_space<vmem>>, %arg5: memref<4x4xf32, #tpu.memory_space<vmem>>, %arg6: memref<4x4xf32, #tpu.memory_space<vmem>>, %arg7: memref<128x128xf32, #tpu.memory_space<vmem>>) attributes {dimension_semantics = [#tpu.dimension_semantics<parallel>], iteration_bounds = array<i64: 1>, scalar_prefetch = 0 : i64, scratch_operands = 0 : i64, tpu.core_type = #tpu.core_type<tc>, window_params = [{transform_indices = @transform_0, window_bounds = array<i64: 128, 1>}, {transform_indices = @transform_1, window_bounds = array<i64: 128, 4>}, {pipeline_mode = #tpu.pipeline_mode<synchronous>, transform_indices = @transform_2, window_bounds = array<i64: 8, 128>}, {pipeline_mode = #tpu.pipeline_mode<synchronous>, transform_indices = @transform_3, window_bounds = array<i64: 4, 128, 128>}, {pipeline_mode = #tpu.pipeline_mode<synchronous>, transform_indices = @transform_4, window_bounds = array<i64: 4, 4>}, {pipeline_mode = #tpu.pipeline_mode<synchronous>, transform_indices = @transform_5, window_bounds = array<i64: 4, 4>}, {transform_indices = @transform_6, window_bounds = array<i64: 128, 128>}]} {
    %c0 = arith.constant 0 : index
    %c0_0 = arith.constant 0 : index
    %0 = vector.load %arg1[%c0, %c0_0] : memref<128x1xi32, #tpu.memory_space<vmem>>, vector<128x1xi32>
    %1 = tpu.iota {dimensions = array<i32: 1>} : vector<128x8xi32>
    %2 = vector.broadcast %0 : vector<128x1xi32> to vector<128x8xi32>
    %3 = arith.cmpi eq, %1, %2 : vector<128x8xi32>
    %4 = arith.extui %3 : vector<128x8xi1> to vector<128x8xi32>
    %5 = arith.sitofp %4 : vector<128x8xi32> to vector<128x8xf32>
    %c0_1 = arith.constant 0 : index
    %c0_2 = arith.constant 0 : index
    %6 = vector.load %arg3[%c0_1, %c0_2] : memref<8x128xf32, #tpu.memory_space<vmem>>, vector<8x128xf32>
    %cst = arith.constant dense<0.000000e+00> : vector<128x128xf32>
    %7 = tpu.matmul %5, %6, %cst {dimension_numbers = #tpu.dot_dimension_numbers<[1], [0], [0], [1], [0, 0, 1, 1], [], []>} : vector<128x8xf32>, vector<8x128xf32>, vector<128x128xf32> -> vector<128x128xf32>
    %c0_3 = arith.constant 0 : index
    %c0_4 = arith.constant 0 : index
    %8 = vector.load %arg2[%c0_3, %c0_4] : memref<128x4xf32, #tpu.memory_space<vmem>>, vector<128x4xf32>
    %c0_5 = arith.constant 0 : index
    %c0_6 = arith.constant 0 : index
    %9 = vector.load %arg5[%c0_5, %c0_6] : memref<4x4xf32, #tpu.memory_space<vmem>>, vector<4x4xf32>
    %c0_7 = arith.constant 0 : index
    %c0_8 = arith.constant 0 : index
    %10 = vector.load %arg6[%c0_7, %c0_8] : memref<4x4xf32, #tpu.memory_space<vmem>>, vector<4x4xf32>
    %cst_9 = arith.constant 0.000000e+00 : f32
    %11 = vector.broadcast %cst_9 : f32 to vector<128x128xf32>
    %12 = vector.extract_strided_slice %9 {offsets = [0, 0], sizes = [1, 4], strides = [1, 1]} : vector<4x4xf32> to vector<1x4xf32>
    %13 = vector.broadcast %12 : vector<1x4xf32> to vector<128x4xf32>
    %14 = arith.subf %8, %13 : vector<128x4xf32>
    %15 = arith.mulf %14, %14 : vector<128x4xf32>
    %16 = vector.extract_strided_slice %10 {offsets = [0, 0], sizes = [1, 4], strides = [1, 1]} : vector<4x4xf32> to vector<1x4xf32>
    %17 = vector.broadcast %16 : vector<1x4xf32> to vector<128x4xf32>
    %18 = arith.mulf %15, %17 : vector<128x4xf32>
    %cst_10 = arith.constant dense<0.000000e+00> : vector<128xf32>
    %19 = vector.multi_reduction <add>, %18, %cst_10 [1] : vector<128x4xf32> to vector<128xf32>
    %20 = vector.shape_cast %19 : vector<128xf32> to vector<128x1xf32>
    %cst_11 = arith.constant -5.000000e-01 : f32
    %21 = vector.broadcast %cst_11 : f32 to vector<128x1xf32>
    %22 = arith.mulf %21, %20 : vector<128x1xf32>
    %23 = math.exp %22 : vector<128x1xf32>
    %c0_12 = arith.constant 0 : index
    %c0_13 = arith.constant 0 : index
    %c0_14 = arith.constant 0 : index
    %24 = vector.load %arg4[%c0_12, %c0_13, %c0_14] : memref<4x128x128xf32, #tpu.memory_space<vmem>>, vector<1x128x128xf32>
    %25 = vector.shape_cast %24 : vector<1x128x128xf32> to vector<128x128xf32>
    %cst_15 = arith.constant dense<0.000000e+00> : vector<128x128xf32>
    %26 = tpu.matmul %7, %25, %cst_15 {dimension_numbers = #tpu.dot_dimension_numbers<[1], [0], [0], [1], [0, 0, 1, 1], [], []>} : vector<128x128xf32>, vector<128x128xf32>, vector<128x128xf32> -> vector<128x128xf32>
    %27 = vector.broadcast %23 : vector<128x1xf32> to vector<128x128xf32>
    %28 = arith.mulf %27, %26 : vector<128x128xf32>
    %29 = arith.addf %11, %28 : vector<128x128xf32>
    %30 = vector.extract_strided_slice %9 {offsets = [1, 0], sizes = [1, 4], strides = [1, 1]} : vector<4x4xf32> to vector<1x4xf32>
    %31 = vector.broadcast %30 : vector<1x4xf32> to vector<128x4xf32>
    %32 = arith.subf %8, %31 : vector<128x4xf32>
    %33 = arith.mulf %32, %32 : vector<128x4xf32>
    %34 = vector.extract_strided_slice %10 {offsets = [1, 0], sizes = [1, 4], strides = [1, 1]} : vector<4x4xf32> to vector<1x4xf32>
    %35 = vector.broadcast %34 : vector<1x4xf32> to vector<128x4xf32>
    %36 = arith.mulf %33, %35 : vector<128x4xf32>
    %cst_16 = arith.constant dense<0.000000e+00> : vector<128xf32>
    %37 = vector.multi_reduction <add>, %36, %cst_16 [1] : vector<128x4xf32> to vector<128xf32>
    %38 = vector.shape_cast %37 : vector<128xf32> to vector<128x1xf32>
    %cst_17 = arith.constant -5.000000e-01 : f32
    %39 = vector.broadcast %cst_17 : f32 to vector<128x1xf32>
    %40 = arith.mulf %39, %38 : vector<128x1xf32>
    %41 = math.exp %40 : vector<128x1xf32>
    %c1 = arith.constant 1 : index
    %c0_18 = arith.constant 0 : index
    %c0_19 = arith.constant 0 : index
    %42 = vector.load %arg4[%c1, %c0_18, %c0_19] : memref<4x128x128xf32, #tpu.memory_space<vmem>>, vector<1x128x128xf32>
    %43 = vector.shape_cast %42 : vector<1x128x128xf32> to vector<128x128xf32>
    %cst_20 = arith.constant dense<0.000000e+00> : vector<128x128xf32>
    %44 = tpu.matmul %7, %43, %cst_20 {dimension_numbers = #tpu.dot_dimension_numbers<[1], [0], [0], [1], [0, 0, 1, 1], [], []>} : vector<128x128xf32>, vector<128x128xf32>, vector<128x128xf32> -> vector<128x128xf32>
    %45 = vector.broadcast %41 : vector<128x1xf32> to vector<128x128xf32>
    %46 = arith.mulf %45, %44 : vector<128x128xf32>
    %47 = arith.addf %29, %46 : vector<128x128xf32>
    %48 = vector.extract_strided_slice %9 {offsets = [2, 0], sizes = [1, 4], strides = [1, 1]} : vector<4x4xf32> to vector<1x4xf32>
    %49 = vector.broadcast %48 : vector<1x4xf32> to vector<128x4xf32>
    %50 = arith.subf %8, %49 : vector<128x4xf32>
    %51 = arith.mulf %50, %50 : vector<128x4xf32>
    %52 = vector.extract_strided_slice %10 {offsets = [2, 0], sizes = [1, 4], strides = [1, 1]} : vector<4x4xf32> to vector<1x4xf32>
    %53 = vector.broadcast %52 : vector<1x4xf32> to vector<128x4xf32>
    %54 = arith.mulf %51, %53 : vector<128x4xf32>
    %cst_21 = arith.constant dense<0.000000e+00> : vector<128xf32>
    %55 = vector.multi_reduction <add>, %54, %cst_21 [1] : vector<128x4xf32> to vector<128xf32>
    %56 = vector.shape_cast %55 : vector<128xf32> to vector<128x1xf32>
    %cst_22 = arith.constant -5.000000e-01 : f32
    %57 = vector.broadcast %cst_22 : f32 to vector<128x1xf32>
    %58 = arith.mulf %57, %56 : vector<128x1xf32>
    %59 = math.exp %58 : vector<128x1xf32>
    %c2 = arith.constant 2 : index
    %c0_23 = arith.constant 0 : index
    %c0_24 = arith.constant 0 : index
    %60 = vector.load %arg4[%c2, %c0_23, %c0_24] : memref<4x128x128xf32, #tpu.memory_space<vmem>>, vector<1x128x128xf32>
    %61 = vector.shape_cast %60 : vector<1x128x128xf32> to vector<128x128xf32>
    %cst_25 = arith.constant dense<0.000000e+00> : vector<128x128xf32>
    %62 = tpu.matmul %7, %61, %cst_25 {dimension_numbers = #tpu.dot_dimension_numbers<[1], [0], [0], [1], [0, 0, 1, 1], [], []>} : vector<128x128xf32>, vector<128x128xf32>, vector<128x128xf32> -> vector<128x128xf32>
    %63 = vector.broadcast %59 : vector<128x1xf32> to vector<128x128xf32>
    %64 = arith.mulf %63, %62 : vector<128x128xf32>
    %65 = arith.addf %47, %64 : vector<128x128xf32>
    %66 = vector.extract_strided_slice %9 {offsets = [3, 0], sizes = [1, 4], strides = [1, 1]} : vector<4x4xf32> to vector<1x4xf32>
    %67 = vector.broadcast %66 : vector<1x4xf32> to vector<128x4xf32>
    %68 = arith.subf %8, %67 : vector<128x4xf32>
    %69 = arith.mulf %68, %68 : vector<128x4xf32>
    %70 = vector.extract_strided_slice %10 {offsets = [3, 0], sizes = [1, 4], strides = [1, 1]} : vector<4x4xf32> to vector<1x4xf32>
    %71 = vector.broadcast %70 : vector<1x4xf32> to vector<128x4xf32>
    %72 = arith.mulf %69, %71 : vector<128x4xf32>
    %cst_26 = arith.constant dense<0.000000e+00> : vector<128xf32>
    %73 = vector.multi_reduction <add>, %72, %cst_26 [1] : vector<128x4xf32> to vector<128xf32>
    %74 = vector.shape_cast %73 : vector<128xf32> to vector<128x1xf32>
    %cst_27 = arith.constant -5.000000e-01 : f32
    %75 = vector.broadcast %cst_27 : f32 to vector<128x1xf32>
    %76 = arith.mulf %75, %74 : vector<128x1xf32>
    %77 = math.exp %76 : vector<128x1xf32>
    %c3 = arith.constant 3 : index
    %c0_28 = arith.constant 0 : index
    %c0_29 = arith.constant 0 : index
    %78 = vector.load %arg4[%c3, %c0_28, %c0_29] : memref<4x128x128xf32, #tpu.memory_space<vmem>>, vector<1x128x128xf32>
    %79 = vector.shape_cast %78 : vector<1x128x128xf32> to vector<128x128xf32>
    %cst_30 = arith.constant dense<0.000000e+00> : vector<128x128xf32>
    %80 = tpu.matmul %7, %79, %cst_30 {dimension_numbers = #tpu.dot_dimension_numbers<[1], [0], [0], [1], [0, 0, 1, 1], [], []>} : vector<128x128xf32>, vector<128x128xf32>, vector<128x128xf32> -> vector<128x128xf32>
    %81 = vector.broadcast %77 : vector<128x1xf32> to vector<128x128xf32>
    %82 = arith.mulf %81, %80 : vector<128x128xf32>
    %83 = arith.addf %65, %82 : vector<128x128xf32>
    %c0_31 = arith.constant 0 : index
    %c0_32 = arith.constant 0 : index
    %84 = vector.load %arg7[%c0_31, %c0_32] : memref<128x128xf32, #tpu.memory_space<vmem>>, vector<128x128xf32>
    tpu.vector_store %arg7[%c0_31, %c0_32], %83 {strides = array<i32>} : memref<128x128xf32, #tpu.memory_space<vmem>>, vector<128x128xf32>,
    return
  }
  func.func @transform_0(%arg0: i32) -> (i32, i32) {
    %c0_i32 = arith.constant 0 : i32
    %c0_i32_0 = arith.constant 0 : i32
    return %arg0, %c0_i32 : i32, i32
  }
  func.func @transform_1(%arg0: i32) -> (i32, i32) {
    %c0_i32 = arith.constant 0 : i32
    %c0_i32_0 = arith.constant 0 : i32
    return %arg0, %c0_i32 : i32, i32
  }
  func.func @transform_2(%arg0: i32) -> (i32, i32) {
    %c0_i32 = arith.constant 0 : i32
    %c0_i32_0 = arith.constant 0 : i32
    %c0_i32_1 = arith.constant 0 : i32
    return %c0_i32, %c0_i32_0 : i32, i32
  }
  func.func @transform_3(%arg0: i32) -> (i32, i32, i32) {
    %c0_i32 = arith.constant 0 : i32
    %c0_i32_0 = arith.constant 0 : i32
    %c0_i32_1 = arith.constant 0 : i32
    %c0_i32_2 = arith.constant 0 : i32
    return %c0_i32, %c0_i32_0, %c0_i32_1 : i32, i32, i32
  }
  func.func @transform_4(%arg0: i32) -> (i32, i32) {
    %c0_i32 = arith.constant 0 : i32
    %c0_i32_0 = arith.constant 0 : i32
    %c0_i32_1 = arith.constant 0 : i32
    return %c0_i32, %c0_i32_0 : i32, i32
  }
  func.func @transform_5(%arg0: i32) -> (i32, i32) {
    %c0_i32 = arith.constant 0 : i32
    %c0_i32_0 = arith.constant 0 : i32
    %c0_i32_1 = arith.constant 0 : i32
    return %c0_i32, %c0_i32_0 : i32, i32
  }
  func.func @transform_6(%arg0: i32) -> (i32, i32) {
    %c0_i32 = arith.constant 0 : i32
    %c0_i32_0 = arith.constant 0 : i32
    return %arg0, %c0_i32 : i32, i32
  }
}

module attributes {stable_mosaic.version = 11 : i64} {
  func.func @_scatter_sum_kernel(%arg0: i32, %arg1: i32, %arg2: memref<1x128xi32, #tpu.memory_space<vmem>>, %arg3: memref<128x128xf32, #tpu.memory_space<vmem>>, %arg4: memref<1x128xf32, #tpu.memory_space<vmem>>, %arg5: memref<8x128xf32, #tpu.memory_space<vmem>>) attributes {dimension_semantics = [#tpu.dimension_semantics<parallel>, #tpu.dimension_semantics<arbitrary>], iteration_bounds = array<i64: 1, 1>, scalar_prefetch = 0 : i64, scratch_operands = 0 : i64, tpu.core_type = #tpu.core_type<tc>, window_params = [{transform_indices = @transform_0, window_bounds = array<i64: 1, 128>}, {transform_indices = @transform_1, window_bounds = array<i64: 128, 128>}, {pipeline_mode = #tpu.pipeline_mode<synchronous>, transform_indices = @transform_2, window_bounds = array<i64: 1, 128>}, {transform_indices = @transform_3, window_bounds = array<i64: 8, 128>}]} {
    %c0_i32 = arith.constant 0 : i32
    %0 = arith.cmpi eq, %arg1, %c0_i32 : i32
    %1 = arith.extui %0 : i1 to i32
    %c0_i32_0 = arith.constant 0 : i32
    %2 = arith.cmpi ne, %1, %c0_i32_0 : i32
    scf.if %2 {
      %cst_10 = arith.constant 0.000000e+00 : f32
      %20 = vector.broadcast %cst_10 : f32 to vector<8x128xf32>
      %c0_11 = arith.constant 0 : index
      %c0_12 = arith.constant 0 : index
      %21 = vector.load %arg5[%c0_11, %c0_12] : memref<8x128xf32, #tpu.memory_space<vmem>>, vector<8x128xf32>
      tpu.vector_store %arg5[%c0_11, %c0_12], %20 {strides = array<i32>} : memref<8x128xf32, #tpu.memory_space<vmem>>, vector<8x128xf32>,
    } else {
    }
    %c0 = arith.constant 0 : index
    %c0_1 = arith.constant 0 : index
    %3 = vector.load %arg2[%c0, %c0_1] : memref<1x128xi32, #tpu.memory_space<vmem>>, vector<1x128xi32>
    %4 = tpu.iota {dimensions = array<i32: 0>} : vector<8x128xi32>
    %c8_i32 = arith.constant 8 : i32
    %5 = arith.muli %arg0, %c8_i32 : i32
    %6 = vector.broadcast %5 : i32 to vector<8x128xi32>
    %7 = arith.addi %4, %6 : vector<8x128xi32>
    %8 = vector.broadcast %3 : vector<1x128xi32> to vector<8x128xi32>
    %9 = arith.cmpi eq, %7, %8 : vector<8x128xi32>
    %10 = arith.extui %9 : vector<8x128xi1> to vector<8x128xi32>
    %11 = arith.sitofp %10 : vector<8x128xi32> to vector<8x128xf32>
    %c0_2 = arith.constant 0 : index
    %c0_3 = arith.constant 0 : index
    %12 = vector.load %arg5[%c0_2, %c0_3] : memref<8x128xf32, #tpu.memory_space<vmem>>, vector<8x128xf32>
    %c0_4 = arith.constant 0 : index
    %c0_5 = arith.constant 0 : index
    %13 = vector.load %arg3[%c0_4, %c0_5] : memref<128x128xf32, #tpu.memory_space<vmem>>, vector<128x128xf32>
    %cst = arith.constant dense<0.000000e+00> : vector<8x128xf32>
    %14 = tpu.matmul %11, %13, %cst {dimension_numbers = #tpu.dot_dimension_numbers<[1], [0], [0], [1], [0, 0, 1, 1], [], []>} : vector<8x128xf32>, vector<128x128xf32>, vector<8x128xf32> -> vector<8x128xf32>
    %15 = arith.addf %12, %14 : vector<8x128xf32>
    %c0_6 = arith.constant 0 : index
    %c0_7 = arith.constant 0 : index
    %16 = vector.load %arg5[%c0_6, %c0_7] : memref<8x128xf32, #tpu.memory_space<vmem>>, vector<8x128xf32>
    tpu.vector_store %arg5[%c0_6, %c0_7], %15 {strides = array<i32>} : memref<8x128xf32, #tpu.memory_space<vmem>>, vector<8x128xf32>,
    %c0_i32_8 = arith.constant 0 : i32
    %17 = arith.cmpi eq, %arg1, %c0_i32_8 : i32
    %18 = arith.extui %17 : i1 to i32
    %c0_i32_9 = arith.constant 0 : i32
    %19 = arith.cmpi ne, %18, %c0_i32_9 : i32
    scf.if %19 {
      %c0_10 = arith.constant 0 : index
      %c0_11 = arith.constant 0 : index
      %20 = vector.load %arg5[%c0_10, %c0_11] : memref<8x128xf32, #tpu.memory_space<vmem>>, vector<8x128xf32>
      %c0_12 = arith.constant 0 : index
      %c0_13 = arith.constant 0 : index
      %21 = vector.load %arg4[%c0_12, %c0_13] : memref<1x128xf32, #tpu.memory_space<vmem>>, vector<1x128xf32>
      %22 = vector.broadcast %21 : vector<1x128xf32> to vector<8x128xf32>
      %23 = arith.addf %20, %22 : vector<8x128xf32>
      %c0_14 = arith.constant 0 : index
      %c0_15 = arith.constant 0 : index
      %24 = vector.load %arg5[%c0_14, %c0_15] : memref<8x128xf32, #tpu.memory_space<vmem>>, vector<8x128xf32>
      tpu.vector_store %arg5[%c0_14, %c0_15], %23 {strides = array<i32>} : memref<8x128xf32, #tpu.memory_space<vmem>>, vector<8x128xf32>,
    } else {
    }
    return
  }
  func.func @transform_0(%arg0: i32, %arg1: i32) -> (i32, i32) {
    %c0_i32 = arith.constant 0 : i32
    %c0_i32_0 = arith.constant 0 : i32
    return %c0_i32, %arg1 : i32, i32
  }
  func.func @transform_1(%arg0: i32, %arg1: i32) -> (i32, i32) {
    %c0_i32 = arith.constant 0 : i32
    %c0_i32_0 = arith.constant 0 : i32
    return %arg1, %c0_i32 : i32, i32
  }
  func.func @transform_2(%arg0: i32, %arg1: i32) -> (i32, i32) {
    %c0_i32 = arith.constant 0 : i32
    %c0_i32_0 = arith.constant 0 : i32
    %c0_i32_1 = arith.constant 0 : i32
    return %c0_i32, %c0_i32_0 : i32, i32
  }
  func.func @transform_3(%arg0: i32, %arg1: i32) -> (i32, i32) {
    %c0_i32 = arith.constant 0 : i32
    %c0_i32_0 = arith.constant 0 : i32
    return %arg0, %c0_i32 : i32, i32
  }
}

</mosaic_0001>

<bundles_post_ra>
// kernel: integer_pow.1
= control target key start
LH: loop header
LB: loop body
LE: loop exit
PB: predicated region body
PF: predicated region fallthrough
CT: control target
= control target key end

     0   :  { %s34_s0 = inlined_call_operand.vmem [shape: f32[4,4], index: 0, kind: input, shape index: {}, may-alias: {0,1}]   ;;  %s35_s1 = inlined_call_operand.vmem [shape: f32[4,4], index: 1, kind: input, shape index: {}, may-alias: {0,1}]   ;;  %s36_s2 = inlined_call_operand.vmem [shape: f32[4,4], index: 2, kind: output, shape index: {}]  }
   0x1   :  { %v3_v0 = vld [vmem:[%s34_s0] sm:$0xf] }
   0x2   :  { %v4_v1 = vld [vmem:[%s35_s1] sm:$0xf] }
   0x3   :  { %v7_v2 = vmul.f32 %v4_v1, %v3_v0 }
   0x5   :  { %9 = vst [vmem:[%s36_s2] sm:$0xf] %v7_v2 }

// kernel: gmmconv_forward.3
= control target key start
LH: loop header
LB: loop body
LE: loop exit
PB: predicated region body
PF: predicated region fallthrough
CT: control target
= control target key end

     0   :  { %v258_v3 = vmov 0.0|0.0   ;;  %vm259_vm0 = vmmov 0   ;;  %v260_v6 = vmov 0.0   ;;  %s349_s0 = inlined_call_operand.vmem [shape: s32[1,128], index: 0, kind: input, shape index: {}]   ;;  %s350_s1 = inlined_call_operand.vmem [shape: f32[128,128], index: 1, kind: input, shape index: {}]   ;;  %s351_s2 = inlined_call_operand.vmem [shape: f32[1,128], index: 2, kind: input, shape index: {}]   ;;  %s352_s3 = inlined_call_operand.hbm [shape: f32[8,128], index: 3, kind: output, shape index: {}]  }
   0x1   :  { %v34_v0 = vld [vmem:[%s350_s1] sm:$0xff]  ;;  %v35_v1 = vld [vmem:[%s350_s1 + $0x8] sm:$0xff]  ;;  %v36_v2 = vld [vmem:[%s350_s1 + $0x10] sm:$0xff]  ;;  %205 = vmatprep.subr.bf16.mxu0 %v258_v3  ;;  %202 = vmatprep.mubr.msk.f32.mxu0 %vm259_vm0, %v260_v6 }
   0x2   :  { %v206_v4 = vpack.c.bf16 %v35_v1, %v34_v0  ;;  %v37_v5 = vld [vmem:[%s350_s1 + $0x18] sm:$0xff]  ;;  %v38_v8 = vld [vmem:[%s350_s1 + $0x20] sm:$0xff]  ;;  %v39_v9 = vld [vmem:[%s350_s1 + $0x28] sm:$0xff] }
   0x3   :  { %v209_v7 = vpack.c.bf16 %v37_v5, %v36_v2 }
   0x4   :  { %207 = vmatpush3.bf16.msra.mxu0 %v206_v4 }
   0x5   :  { %208 = vmatprep.subr.bf16.mxu0 %v258_v3 }
   0x6   :  { %8 = vsyncpa [#allocation3], 0  ;;  %v212_v10 = vpack.c.bf16 %v39_v9, %v38_v8  ;;  %v40_v11 = vld [vmem:[%s350_s1 + $0x30] sm:$0xff]  ;;  %v41_v12 = vld [vmem:[%s350_s1 + $0x38] sm:$0xff]  ;;  %v21_v23 = vlaneseq  ;;  %v261_v29 = vmov 1.0   ;;  %s262_s21 = smov [#allocation2]  }
   0x7   :  { %v215_v13 = vpack.c.bf16 %v41_v12, %v40_v11  ;;  %v42_v14 = vld [vmem:[%s350_s1 + $0x40] sm:$0xff]  ;;  %v43_v15 = vld [vmem:[%s350_s1 + $0x48] sm:$0xff]  ;;  %v44_v17 = vld [vmem:[%s350_s1 + $0x50] sm:$0xff]  ;;  %s141_s22 = sshll.u32 %s262_s21, 4  ;;  %s142_s22 = int_to_ptr.vmem [resolvable:$true] %s141_s22 }
   0x8   :  { %210 = vmatpush3.bf16.msra.mxu0 %v209_v7  ;;  %v218_v16 = vpack.c.bf16 %v43_v15, %v42_v14  ;;  %v45_v18 = vld [vmem:[%s350_s1 + $0x58] sm:$0xff]  ;;  %v46_v20 = vld [vmem:[%s350_s1 + $0x60] sm:$0xff]  ;;  %v47_v21 = vld [vmem:[%s350_s1 + $0x68] sm:$0xff]  ;;  %v22_v27 = vshrl.u32 %v21_v23, 7  ;;  %p239_p1 = scmp.lt.s32.totalorder %s142_s22, %s142_s22 }
   0x9   :  { %211 = vmatprep.subr.bf16.mxu0 %v258_v3  ;;  %v221_v19 = vpack.c.bf16 %v45_v18, %v44_v17  ;;  %v224_v22 = vpack.c.bf16 %v47_v21, %v46_v20  ;;  %v48_v24 = vld [vmem:[%s350_s1 + $0x70] sm:$0xff]  ;;  %v49_v25 = vld [vmem:[%s350_s1 + $0x78] sm:$0xff]  ;;  %v149_v28 = vld [vmem:[%s349_s0] ss:$0 sm:$0xff]  ;;  %s234_s1 = scalar_lea.vmem %s142_s22, 128 }
   0xa   :  { %v227_v26 = vpack.c.bf16 %v49_v25, %v48_v24  ;;  %vm30_vm1 = vcmp.eq.s32.totalorder %v22_v27, %v149_v28  ;;  %v152_v31 = vld [vmem:[%s351_s2] ss:$0 sm:$0xff]  ;;  %p235_p0 = scmp.ne.s32.totalorder %s142_s22, %s234_s1  ;;  %p240_p2 = scmp.lt.s32.totalorder %s234_s1, %s234_s1 }
   0xc   :  { %213 = vmatpush3.bf16.msra.mxu0 %v212_v10  ;;  %p241_p3 = por %p240_p2, %p239_p1 }
   0xd   :  { %214 = vmatprep.subr.bf16.mxu0 %v258_v3 }
   0xe   :  { %p242_p4 = pnand %p241_p3, %p235_p0 }
  0x10   :  { %216 = vmatpush3.bf16.msra.mxu0 %v215_v13 }
  0x11   :  { %217 = vmatprep.subr.bf16.mxu0 %v258_v3 }
  0x14   :  { %219 = vmatpush3.bf16.msra.mxu0 %v218_v16 }
  0x15   :  { %220 = vmatprep.subr.bf16.mxu0 %v258_v3 }
  0x18   :  { %222 = vmatpush3.bf16.msra.mxu0 %v221_v19 }
  0x19   :  { %223 = vmatprep.subr.bf16.mxu0 %v258_v3 }
  0x1c   :  { %225 = vmatpush3.bf16.msra.mxu0 %v224_v22 }
  0x1d   :  { %226 = vmatprep.subr.bf16.mxu0 %v258_v3 }
  0x20   :  { %228 = vmatpush3.bf16.msra.mxu0 %v227_v26 }
  0x23   :  { %203 = vmatmul.mubr.msk.f32.vlgmr.msra.gmra.mrb[0].mxu0 %vm30_vm1, %v261_v29 }
  0xf6   :  { %v116_v30 = vpop.f32.mrb[0].mxu0 }
  0xf7   :  { %v204_v32 = vpop.f32.mrb[1].mxu0  ;;  %v133_v33 = vadd.f32 %v152_v31, %v116_v30 }
  0xf9   :  { %134 = vst [vmem:[#allocation2] sm:$0xff] %v133_v33 }
  0xfa   :  { %245 = shalt.err (!%p242_p4)
}
  0xfb   :  { %s246_s24 = scalar_lea.hbm %s352_s3, 128 }
  0xfc   :  { %p247_p5 = scmp.ne.s32.totalorder %s352_s3, %s246_s24  ;;  %p250_p6 = scmp.lt.u32.totalorder %s246_s24, %s352_s3 }
  0xfe   :  { %p252_p7 = pnand %p250_p6, %p247_p5 }
 0x100   :  { %255 = shalt.err (!%p252_p7)
}
 0x101   :  { %144 = dma.vmem_to_hbm [thread:$0]  %s142_s22, 128, %s352_s3, [#allocation3]  }
 0x102   :  { %256 = dma.done.wait [#allocation3], 128  }
 0x103   :  { %257 = vsyncadd [#allocation3], 4294967168 }
 0x104   :  { %148 = vsyncpa [#allocation3], 1 }

// kernel: gmmconv_forward.2
= control target key start
LH: loop header
LB: loop body
LE: loop exit
PB: predicated region body
PF: predicated region fallthrough
CT: control target
= control target key end

     0   :  { %v2489_v0 = vmov 0   ;;  %v39_v18 = vlaneseq  ;;  %vm406_vm0 = vcmask 31744   ;;  %vm138_vm1 = vcmask 64512   ;;  %s3575_s0 = inlined_call_operand.vmem [shape: s32[128,1], index: 0, kind: input, shape index: {}]   ;;  %s3576_s2 = inlined_call_operand.vmem [shape: f32[8,128], index: 2, kind: input, shape index: {}]   ;;  %s3577_s3 = inlined_call_operand.vmem [shape: f32[4,128,128], index: 3, kind: input, shape index: {}]   ;;  %s3578_s1 = inlined_call_operand.vmem [shape: f32[128,4], index: 1, kind: input, shape index: {}]   ;;  %s3579_s4 = inlined_call_operand.vmem [shape: f32[4,4], index: 4, kind: input, shape index: {}]   ;;  %s3580_s5 = inlined_call_operand.vmem [shape: f32[4,4], index: 5, kind: input, shape index: {}]   ;;  %s3581_s6 = inlined_call_operand.vmem [shape: f32[128,128], index: 6, kind: output, shape index: {}]  }
   0x1   :  { %2360 = vset.pattern.permute.xlu1 %v2489_v0  ;;  %2359 = vset.pattern.permute.xlu0 %v2489_v0  ;;  %v25_v1 = vld [vmem:[%s3575_s0 + $0x10] sm:$0xff]  ;;  %v23_v2 = vld [vmem:[%s3575_s0] sm:$0xff]  ;;  %v26_v3 = vld [vmem:[%s3575_s0 + $0x18] sm:$0xff] }
   0x2   :  { %48 = vperm.xlu1 %2360, %v25_v1   ;;  %42 = vperm.xlu0 %2359, %v23_v2   ;;  %v24_v4 = vld [vmem:[%s3575_s0 + $0x8] sm:$0xff]  ;;  %v137_v5 = vld [vmem:[%s3576_s2] sm:$0xff]  ;;  %v30_v8 = vld [vmem:[%s3575_s0 + $0x38] sm:$0xff]  ;;  %v2578_v19 = vshrl.u32 %v39_v18, 7 }
   0x3   :  { %v28_v6 = vld [vmem:[%s3575_s0 + $0x28] sm:$0xff]  ;;  %v27_v7 = vld [vmem:[%s3575_s0 + $0x20] sm:$0xff]  ;;  %1979 = vmatprep.subr.mxu0 %v137_v5  ;;  %v29_v9 = vld [vmem:[%s3575_s0 + $0x30] sm:$0xff] }
   0x4   :  { %1980 = vmatpush3.msra.mxu0 %v137_v5  ;;  %v32_v10 = vld [vmem:[%s3575_s0 + $0x48] sm:$0xff]  ;;  %v31_v11 = vld [vmem:[%s3575_s0 + $0x40] sm:$0xff]  ;;  %v34_v12 = vld [vmem:[%s3575_s0 + $0x58] sm:$0xff]  ;;  %v352_v31 = vsub.s32 0, %v2578_v19 }
   0x5   :  { %v33_v13 = vld [vmem:[%s3575_s0 + $0x50] sm:$0xff]  ;;  %v36_v14 = vld [vmem:[%s3575_s0 + $0x68] sm:$0xff]  ;;  %v35_v15 = vld [vmem:[%s3575_s0 + $0x60] sm:$0xff] }
   0x6   :  { %51 = vperm.xlu1 %2360, %v26_v3   ;;  %45 = vperm.xlu0 %2359, %v24_v4   ;;  %v38_v16 = vld [vmem:[%s3575_s0 + $0x78] sm:$0xff]  ;;  %v37_v17 = vld [vmem:[%s3575_s0 + $0x70] sm:$0xff]  ;;  %v503_v20 = vld [vmem:[%s3577_s3] sm:$0xff] }
   0x7   :  { %v504_v21 = vld [vmem:[%s3577_s3 + $0x8] sm:$0xff]  ;;  %v1786_v22 = vld [vmem:[%s3577_s3 + $0x80] sm:$0xff]  ;;  %v505_v25 = vld [vmem:[%s3577_s3 + $0x10] sm:$0xff] }
   0x8   :  { %v2229_v23 = vpack.c.bf16 %v504_v21, %v503_v20  ;;  %v1787_v24 = vld [vmem:[%s3577_s3 + $0x88] sm:$0xff]  ;;  %v506_v26 = vld [vmem:[%s3577_s3 + $0x18] sm:$0xff]  ;;  %v507_v29 = vld [vmem:[%s3577_s3 + $0x20] sm:$0xff] }
   0x9   :  { %v2598_v27 = vpack.c.bf16 %v1787_v24, %v1786_v22  ;;  %v2233_v28 = vpack.c.bf16 %v506_v26, %v505_v25  ;;  %v508_v30 = vld [vmem:[%s3577_s3 + $0x28] sm:$0xff]  ;;  %v509_v33 = vld [vmem:[%s3577_s3 + $0x30] sm:$0xff]  ;;  %v510_v34 = vld [vmem:[%s3577_s3 + $0x38] sm:$0xff] }
   0xa   :  { %57 = vperm.xlu1 %2360, %v28_v6   ;;  %54 = vperm.xlu0 %2359, %v27_v7   ;;  %v2237_v32 = vpack.c.bf16 %v508_v30, %v507_v29  ;;  %v2617_v35 = vld [vmem:[%s3578_s1] sm:$0xff]  ;;  %v2241_v38 = vpack.c.bf16 %v510_v34, %v509_v33  ;;  %v512_v40 = vld [vmem:[%s3577_s3 + $0x48] sm:$0xff]  ;;  %v2643_v43 = vld [vmem:[%s3578_s1 + $0x10] sm:$0xff] }
   0xb   :  { %2230 = vmatprep.subr.bf16.mxu1 %v2229_v23  ;;  %2262 = vmatprep.subr.bf16.mxu0 %v2598_v27  ;;  %v2622_v36 = vld [vmem:[%s3579_s4] sm:$0xf]  ;;  %v2648_v44 = vld [vmem:[%s3578_s1 + $0x8] sm:$0xff]  ;;  %v513_v49 = vld [vmem:[%s3577_s3 + $0x50] sm:$0xff] }
   0xc   :  { %2232 = vmatpush3.bf16.msra.mxu1 %v2229_v23  ;;  %v2625_v37 = vrot.slane %v2622_v36, %v352_v31  ;;  %v511_v39 = vld [vmem:[%s3577_s3 + $0x40] sm:$0xff]  ;;  %v514_v50 = vld [vmem:[%s3577_s3 + $0x58] sm:$0xff]  ;;  %v516_v58 = vld [vmem:[%s3577_s3 + $0x68] sm:$0xff] }
   0xd   :  { %2234 = vmatprep.subr.bf16.mxu1 %v2233_v28  ;;  %v2636_v41 = vld [vmem:[%s3580_s5] sm:$0xf]  ;;  %v2245_v45 = vpack.c.bf16 %v512_v40, %v511_v39  ;;  %v2664_v51 = vld [vmem:[%s3578_s1 + $0x18] sm:$0xff]  ;;  %v2249_v53 = vpack.c.bf16 %v514_v50, %v513_v49  ;;  %v517_v0 = vld [vmem:[%s3577_s3 + $0x70] sm:$0xff] }
   0xe   :  { %63 = vperm.xlu1 %2360, %v30_v8   ;;  %60 = vperm.xlu0 %2359, %v29_v9   ;;  %v354_v42 = vsub.f32 %v2617_v35, %v2625_v37  ;;  %v2651_v47 = vrot.slane %v2636_v41, %v352_v31  ;;  %v356_v48 = vsub.f32 %v2643_v43, %v2625_v37  ;;  %v515_v57 = vld [vmem:[%s3577_s3 + $0x60] sm:$0xff]  ;;  %v518_v1 = vld [vmem:[%s3577_s3 + $0x78] sm:$0xff]  ;;  %v2691_v8 = vand.u32 127, %v39_v18  ;;  %v1791_v22 = vld [vmem:[%s3577_s3 + $0xa8] sm:$0xff] }
   0xf   :  { %v355_v52 = vsub.f32 %v2648_v44, %v2625_v37  ;;  %v357_v56 = vsub.f32 %v2664_v51, %v2625_v37  ;;  %v2253_v61 = vpack.c.bf16 %v516_v58, %v515_v57  ;;  %v2257_v4 = vpack.c.bf16 %v518_v1, %v517_v0  ;;  %v1790_v21 = vld [vmem:[%s3577_s3 + $0xa0] sm:$0xff]  ;;  %v1792_v29 = vld [vmem:[%s3577_s3 + $0xb0] sm:$0xff]  ;;  %v1793_v30 = vld [vmem:[%s3577_s3 + $0xb8] sm:$0xff] }
  0x10   :  { %2236 = vmatpush3.bf16.msra.mxu1 %v2233_v28  ;;  %v370_v46 = vmul.f32 %v354_v42, %v354_v42  ;;  %v372_v55 = vmul.f32 %v356_v48, %v356_v48  ;;  %v2269_v25 = vpack.c.bf16 %v1791_v22, %v1790_v21  ;;  %v1795_v39 = vld [vmem:[%s3577_s3 + $0xc8] sm:$0xff]  ;;  %v1796_v49 = vld [vmem:[%s3577_s3 + $0xd0] sm:$0xff]  ;;  %v1797_v50 = vld [vmem:[%s3577_s3 + $0xd8] sm:$0xff] }
  0x11   :  { %2238 = vmatprep.subr.bf16.mxu1 %v2237_v32  ;;  %v371_v59 = vmul.f32 %v355_v52, %v355_v52  ;;  %v373_v63 = vmul.f32 %v357_v56, %v357_v56  ;;  %v1798_v57 = vld [vmem:[%s3577_s3 + $0xe0] sm:$0xff]  ;;  %v1799_v58 = vld [vmem:[%s3577_s3 + $0xe8] sm:$0xff]  ;;  %v1800_v0 = vld [vmem:[%s3577_s3 + $0xf0] sm:$0xff] }
  0x12   :  { %69 = vperm.xlu1 %2360, %v32_v10   ;;  %66 = vperm.xlu0 %2359, %v31_v11   ;;  %v390_v54 = vmul.f32 %v2651_v47, %v370_v46  ;;  %v392_v62 = vmul.f32 %v2651_v47, %v372_v55  ;;  %v2490_v11 = vmov 0.0   ;;  %v1801_v1 = vld [vmem:[%s3577_s3 + $0xf8] sm:$0xff]  ;;  %v1818_v22 = vld [vmem:[%s3577_s3 + $0x180] sm:$0xff] }
  0x13   :  { %v391_v2 = vmul.f32 %v2651_v47, %v371_v59  ;;  %v393_v5 = vmul.f32 %v2651_v47, %v373_v63 }
  0x14   :  { %2240 = vmatpush3.bf16.msra.mxu1 %v2237_v32  ;;  %v407_v60 = vsel %vm406_vm0, %v390_v54, 0.0  ;;  %v413_v3 = vsel %vm406_vm0, %v392_v62, 0.0  ;;  %v2273_v32 = vpack.c.bf16 %v1793_v30, %v1792_v29  ;;  %v2281_v54 = vpack.c.bf16 %v1797_v50, %v1796_v49 }
  0x15   :  { %2242 = vmatprep.subr.bf16.mxu1 %v2241_v38  ;;  %v410_v6 = vsel %vm406_vm0, %v391_v2, 0.0  ;;  %v416_v7 = vsel %vm406_vm0, %v393_v5, 0.0 }
  0x16   :  { %75 = vperm.xlu1 %2360, %v34_v12   ;;  %72 = vperm.xlu0 %2359, %v33_v13   ;;  %v1788_v13 = vld [vmem:[%s3577_s3 + $0x90] sm:$0xff] }
  0x18   :  { %2244 = vmatpush3.bf16.msra.mxu1 %v2241_v38  ;;  %v1794_v38 = vld [vmem:[%s3577_s3 + $0xc0] sm:$0xff] }
  0x19   :  { %2246 = vmatprep.subr.bf16.mxu1 %v2245_v45 }
  0x1a   :  { %81 = vperm.xlu1 %2360, %v36_v14   ;;  %78 = vperm.xlu0 %2359, %v35_v15   ;;  %v1789_v14 = vld [vmem:[%s3577_s3 + $0x98] sm:$0xff] }
  0x1b   :  { %v2265_v18 = vpack.c.bf16 %v1789_v14, %v1788_v13  ;;  %v2801_v14 = vld [vmem:[%s3578_s1 + $0x38] sm:$0xff] }
  0x1c   :  { %2248 = vmatpush3.bf16.msra.mxu1 %v2245_v45  ;;  %v2277_v45 = vpack.c.bf16 %v1795_v39, %v1794_v38 }
  0x1d   :  { %2250 = vmatprep.subr.bf16.mxu1 %v2249_v53 }
  0x1e   :  { %87 = vperm.xlu1 %2360, %v38_v16   ;;  %84 = vperm.xlu0 %2359, %v37_v17  }
  0x20   :  { %2252 = vmatpush3.bf16.msra.mxu1 %v2249_v53 }
  0x21   :  { %2254 = vmatprep.subr.bf16.mxu1 %v2253_v61 }
  0x24   :  { %2256 = vmatpush3.bf16.msra.mxu1 %v2253_v61  ;;  %v2285_v61 = vpack.c.bf16 %v1799_v58, %v1798_v57 }
  0x25   :  { %2258 = vmatprep.subr.bf16.mxu1 %v2257_v4 }
  0x28   :  { %2260 = vmatpush3.bf16.msra.mxu1 %v2257_v4  ;;  %v2289_v4 = vpack.c.bf16 %v1801_v1, %v1800_v0 }
  0x3d   :  { %408 = vadd.xlane.f32.xlu0 %v407_v60 }
  0x41   :  { %414 = vadd.xlane.f32.xlu0 %v413_v3 }
  0x42   :  { %411 = vadd.xlane.f32.xlu1 %v410_v6 }
  0x45   :  { %417 = vadd.xlane.f32.xlu0 %v416_v7 }
  0x81   :  { %v49_v9 = vpop.permute.xlu1 %48  ;;  %v43_v10 = vpop.permute.xlu0 %42 }
  0x82   :  { %vm89_vm2 = vcmp.eq.s32.totalorder %v2691_v8, %v43_v10  ;;  %vm91_vm3 = vcmp.eq.s32.totalorder %v2691_v8, %v49_v9  ;;  %v2787_v9 = vld [vmem:[%s3578_s1 + $0x28] sm:$0xff] }
  0x83   :  { %v1754_v12 = vsel %vm89_vm2, 1.0, %v2490_v11  ;;  %v1756_v17 = vsel %vm91_vm3, 1.0, %v2490_v11  ;;  %v359_v10 = vsub.f32 %v2787_v9, %v2625_v37 }
  0x84   :  { %1981 = vmatprep.mubr.msk.f32.mxu0 %vm138_vm1, %v1754_v12 }
  0x85   :  { %v52_v15 = vpop.permute.xlu1 %51  ;;  %v46_v16 = vpop.permute.xlu0 %45 }
  0x86   :  { %vm90_vm4 = vcmp.eq.s32.totalorder %v2691_v8, %v46_v16  ;;  %vm92_vm5 = vcmp.eq.s32.totalorder %v2691_v8, %v52_v15  ;;  %v361_v16 = vsub.f32 %v2801_v14, %v2625_v37 }
  0x87   :  { %v1755_v20 = vsel %vm90_vm4, 1.0, %v2490_v11  ;;  %v1757_v26 = vsel %vm92_vm5, 1.0, %v2490_v11 }
  0x88   :  { %1982 = vmatmul.mubr.msk.f32.vlgmr.msra.gmra.mrb[0].mxu0 %vm138_vm1, %v1755_v20  ;;  %v1803_v20 = vld [vmem:[%s3577_s3 + $0x108] sm:$0xff] }
  0x89   :  { %v58_v23 = vpop.permute.xlu1 %57  ;;  %1984 = vmatprep.mubr.msk.f32.mxu0 %vm138_vm1, %v1756_v17  ;;  %v55_v24 = vpop.permute.xlu0 %54  ;;  %2264 = vmatpush3.bf16.msra.mxu0 %v2598_v27  ;;  %v2809_v17 = vld [vmem:[%s3578_s1 + $0x30] sm:$0xff] }
  0x8a   :  { %vm93_vm6 = vcmp.eq.s32.totalorder %v2691_v8, %v55_v24  ;;  %2266 = vmatprep.subr.bf16.mxu0 %v2265_v18  ;;  %vm94_vm7 = vcmp.eq.s32.totalorder %v2691_v8, %v58_v23  ;;  %v360_v23 = vsub.f32 %v2809_v17, %v2625_v37 }
  0x8b   :  { %v1758_v28 = vsel %vm93_vm6, 1.0, %v2490_v11  ;;  %v1759_v33 = vsel %vm94_vm7, 1.0, %v2490_v11 }
  0x8c   :  { %1985 = vmatmul.mubr.msk.f32.gmra.mrb[2].mxu0 %vm138_vm1, %v1757_v26  ;;  %v1819_v26 = vld [vmem:[%s3577_s3 + $0x188] sm:$0xff] }
  0x8d   :  { %v64_v27 = vpop.permute.xlu1 %63  ;;  %1987 = vmatprep.mubr.msk.f32.mxu0 %vm138_vm1, %v1758_v28  ;;  %v61_v31 = vpop.permute.xlu0 %60  ;;  %2268 = vmatpush3.bf16.msra.mxu0 %v2265_v18  ;;  %v1802_v18 = vld [vmem:[%s3577_s3 + $0x100] sm:$0xff]  ;;  %v377_v28 = vmul.f32 %v361_v16, %v361_v16  ;;  %v2830_v30 = vpack.c.bf16 %v1819_v26, %v1818_v22 }
  0x8e   :  { %vm95_vm8 = vcmp.eq.s32.totalorder %v2691_v8, %v61_v31  ;;  %2270 = vmatprep.subr.bf16.mxu0 %v2269_v25  ;;  %vm96_vm9 = vcmp.eq.s32.totalorder %v2691_v8, %v64_v27  ;;  %v2823_v24 = vpack.c.bf16 %v1803_v20, %v1802_v18  ;;  %v376_v27 = vmul.f32 %v360_v23, %v360_v23  ;;  %v2835_v31 = vld [vmem:[%s3578_s1 + $0x48] sm:$0xff] }
  0x8f   :  { %v1760_v34 = vsel %vm95_vm8, 1.0, %v2490_v11  ;;  %v1761_v46 = vsel %vm96_vm9, 1.0, %v2490_v11 }
  0x90   :  { %1988 = vmatmul.mubr.msk.f32.gmra.mrb[4].mxu0 %vm138_vm1, %v1759_v33  ;;  %2294 = vmatprep.subr.bf16.mxu1 %v2823_v24  ;;  %v363_v33 = vsub.f32 %v2835_v31, %v2625_v37  ;;  %v396_v38 = vmul.f32 %v2651_v47, %v376_v27 }
  0x91   :  { %v70_v40 = vpop.permute.xlu1 %69  ;;  %1990 = vmatprep.mubr.msk.f32.mxu0 %vm138_vm1, %v1760_v34  ;;  %v67_v42 = vpop.permute.xlu0 %66  ;;  %2272 = vmatpush3.bf16.msra.mxu0 %v2269_v25  ;;  %v2844_v34 = vld [vmem:[%s3578_s1 + $0x40] sm:$0xff] }
  0x92   :  { %vm97_vm10 = vcmp.eq.s32.totalorder %v2691_v8, %v67_v42  ;;  %2274 = vmatprep.subr.bf16.mxu0 %v2273_v32  ;;  %vm98_vm11 = vcmp.eq.s32.totalorder %v2691_v8, %v70_v40  ;;  %v362_v39 = vsub.f32 %v2844_v34, %v2625_v37  ;;  %v379_v42 = vmul.f32 %v363_v33, %v363_v33 }
  0x93   :  { %v1762_v48 = vsel %vm97_vm10, 1.0, %v2490_v11  ;;  %v1763_v55 = vsel %vm98_vm11, 1.0, %v2490_v11 }
  0x94   :  { %1991 = vmatmul.mubr.msk.f32.gmra.mrb[6].mxu0 %vm138_vm1, %v1761_v46  ;;  %v378_v46 = vmul.f32 %v362_v39, %v362_v39  ;;  %v399_v49 = vmul.f32 %v2651_v47, %v379_v42 }
  0x95   :  { %v76_v52 = vpop.permute.xlu1 %75  ;;  %1993 = vmatprep.mubr.msk.f32.mxu0 %vm138_vm1, %v1762_v48  ;;  %v73_v53 = vpop.permute.xlu0 %72  ;;  %2276 = vmatpush3.bf16.msra.mxu0 %v2273_v32  ;;  %v397_v32 = vmul.f32 %v2651_v47, %v377_v28  ;;  %v2855_v48 = vld [vmem:[%s3578_s1 + $0x58] sm:$0xff] }
  0x96   :  { %vm99_vm12 = vcmp.eq.s32.totalorder %v2691_v8, %v73_v53  ;;  %2278 = vmatprep.subr.bf16.mxu0 %v2277_v45  ;;  %vm100_vm13 = vcmp.eq.s32.totalorder %v2691_v8, %v76_v52  ;;  %v365_v50 = vsub.f32 %v2855_v48, %v2625_v37  ;;  %v2863_v52 = vld [vmem:[%s3578_s1 + $0x50] sm:$0xff]  ;;  %v398_v53 = vmul.f32 %v2651_v47, %v378_v46 }
  0x97   :  { %v1764_v56 = vsel %vm99_vm12, 1.0, %v2490_v11  ;;  %v1765_v62 = vsel %vm100_vm13, 1.0, %v2490_v11  ;;  %v428_v40 = vsel %vm406_vm0, %v397_v32, 0.0 }
  0x98   :  { %1994 = vmatmul.mubr.msk.f32.gmra.mrb[8].mxu0 %vm138_vm1, %v1763_v55  ;;  %v434_v55 = vsel %vm406_vm0, %v399_v49, 0.0  ;;  %v431_v57 = vsel %vm406_vm0, %v398_v53, 0.0 }
  0x99   :  { %v82_v59 = vpop.permute.xlu1 %81  ;;  %1996 = vmatprep.mubr.msk.f32.mxu0 %vm138_vm1, %v1764_v56  ;;  %v79_v60 = vpop.permute.xlu0 %78  ;;  %2280 = vmatpush3.bf16.msra.mxu0 %v2277_v45  ;;  %v425_v45 = vsel %vm406_vm0, %v396_v38, 0.0  ;;  %v381_v56 = vmul.f32 %v365_v50, %v365_v50 }
  0x9a   :  { %vm101_vm14 = vcmp.eq.s32.totalorder %v2691_v8, %v79_v60  ;;  %2282 = vmatprep.subr.bf16.mxu0 %v2281_v54  ;;  %vm102_vm15 = vcmp.eq.s32.totalorder %v2691_v8, %v82_v59  ;;  %v2873_v59 = vld [vmem:[%s3578_s1 + $0x68] sm:$0xff] }
  0x9b   :  { %v1766_v63 = vsel %vm101_vm14, 1.0, %v2490_v11  ;;  %v1767_v5 = vsel %vm102_vm15, 1.0, %v2490_v11  ;;  %v401_v60 = vmul.f32 %v2651_v47, %v381_v56 }
  0x9c   :  { %1997 = vmatmul.mubr.msk.f32.gmra.mrb[10].mxu0 %vm138_vm1, %v1765_v62  ;;  %v2881_v62 = vld [vmem:[%s3578_s1 + $0x60] sm:$0xff] }
  0x9d   :  { %v88_v2 = vpop.permute.xlu1 %87  ;;  %1999 = vmatprep.mubr.msk.f32.mxu0 %vm138_vm1, %v1766_v63  ;;  %v85_v3 = vpop.permute.xlu0 %84  ;;  %2284 = vmatpush3.bf16.msra.mxu0 %v2281_v54  ;;  %v364_v54 = vsub.f32 %v2863_v52, %v2625_v37  ;;  %v366_v0 = vsub.f32 %v2881_v62, %v2625_v37  ;;  %v440_v1 = vsel %vm406_vm0, %v401_v60, 0.0 }
  0x9e   :  { %vm103_vm2 = vcmp.eq.s32.totalorder %v2691_v8, %v85_v3  ;;  %2286 = vmatprep.subr.bf16.mxu0 %v2285_v61  ;;  %vm104_vm3 = vcmp.eq.s32.totalorder %v2691_v8, %v88_v2  ;;  %v2794_v8 = vld [vmem:[%s3578_s1 + $0x20] sm:$0xff] }
  0x9f   :  { %v1768_v6 = vsel %vm103_vm2, 1.0, %v2490_v11  ;;  %v1769_v7 = vsel %vm104_vm3, 1.0, %v2490_v11  ;;  %v358_v12 = vsub.f32 %v2794_v8, %v2625_v37  ;;  %v375_v11 = vmul.f32 %v359_v10, %v359_v10  ;;  %v2899_v10 = vld [vmem:[%s3578_s1 + $0x70] sm:$0xff] }
  0xa0   :  { %2000 = vmatmul.mubr.msk.f32.gmra.mrb[12].mxu0 %vm138_vm1, %v1767_v5  ;;  %v380_v58 = vmul.f32 %v364_v54, %v364_v54  ;;  %v2891_v5 = vld [vmem:[%s3578_s1 + $0x78] sm:$0xff] }
  0xa1   :  { %2002 = vmatprep.mubr.msk.f32.mxu0 %vm138_vm1, %v1768_v6  ;;  %2288 = vmatpush3.bf16.msra.mxu0 %v2285_v61  ;;  %v374_v13 = vmul.f32 %v358_v12, %v358_v12  ;;  %v395_v15 = vmul.f32 %v2651_v47, %v375_v11  ;;  %v367_v61 = vsub.f32 %v2873_v59, %v2625_v37  ;;  %v698_v12 = vsub.s32 1, %v2578_v19 }
  0xa2   :  { %2290 = vmatprep.subr.bf16.mxu0 %v2289_v4  ;;  %v400_v63 = vmul.f32 %v2651_v47, %v380_v58 }
  0xa3   :  { %v394_v21 = vmul.f32 %v2651_v47, %v374_v13  ;;  %v422_v25 = vsel %vm406_vm0, %v395_v15, 0.0  ;;  %v383_v2 = vmul.f32 %v367_v61, %v367_v61  ;;  %v368_v13 = vsub.f32 %v2899_v10, %v2625_v37 }
  0xa4   :  { %2003 = vmatmul.mubr.msk.f32.gmra.mrb[14].mxu0 %vm138_vm1, %v1769_v7  ;;  %423 = vadd.xlane.f32.xlu0 %v422_v25  ;;  %v437_v3 = vsel %vm406_vm0, %v400_v63, 0.0  ;;  %v369_v7 = vsub.f32 %v2891_v5, %v2625_v37  ;;  %v2907_v18 = vrot.slane %v2622_v36, %v698_v12 }
  0xa5   :  { %2292 = vmatpush3.bf16.msra.mxu0 %v2289_v4  ;;  %v419_v29 = vsel %vm406_vm0, %v394_v21, 0.0  ;;  %v382_v4 = vmul.f32 %v366_v0, %v366_v0  ;;  %v403_v6 = vmul.f32 %v2651_v47, %v383_v2  ;;  %v384_v21 = vmul.f32 %v368_v13, %v368_v13 }
  0xa6   :  { %420 = vadd.xlane.f32.xlu1 %v419_v29  ;;  %2326 = vmatprep.subr.bf16.mxu0 %v2830_v30  ;;  %v385_v16 = vmul.f32 %v369_v7, %v369_v7  ;;  %v701_v23 = vsub.f32 %v2648_v44, %v2907_v18  ;;  %v700_v37 = vsub.f32 %v2617_v35, %v2907_v18 }
  0xa7   :  { %v402_v11 = vmul.f32 %v2651_v47, %v382_v4  ;;  %v446_v15 = vsel %vm406_vm0, %v403_v6, 0.0  ;;  %v404_v25 = vmul.f32 %v2651_v47, %v384_v21  ;;  %v2918_v29 = vrot.slane %v2636_v41, %v698_v12 }
  0xa8   :  { %429 = vadd.xlane.f32.xlu0 %v428_v40  ;;  %v405_v22 = vmul.f32 %v2651_v47, %v385_v16  ;;  %v717_v28 = vmul.f32 %v701_v23, %v701_v23  ;;  %v716_v32 = vmul.f32 %v700_v37, %v700_v37  ;;  %v703_v38 = vsub.f32 %v2664_v51, %v2907_v18 }
  0xa9   :  { %v443_v20 = vsel %vm406_vm0, %v402_v11, 0.0  ;;  %v449_v27 = vsel %vm406_vm0, %v404_v25, 0.0  ;;  %v702_v39 = vsub.f32 %v2643_v43, %v2907_v18  ;;  %v705_v53 = vsub.f32 %v2787_v9, %v2907_v18 }
  0xaa   :  { %426 = vadd.xlane.f32.xlu1 %v425_v45  ;;  %v452_v26 = vsel %vm406_vm0, %v405_v22, 0.0  ;;  %v737_v33 = vmul.f32 %v2918_v29, %v717_v28  ;;  %v736_v47 = vmul.f32 %v2918_v29, %v716_v32  ;;  %v719_v42 = vmul.f32 %v703_v38, %v703_v38 }
  0xab   :  { %v718_v46 = vmul.f32 %v702_v39, %v702_v39  ;;  %v707_v61 = vsub.f32 %v2801_v14, %v2907_v18  ;;  %v706_v0 = vsub.f32 %v2809_v17, %v2907_v18  ;;  %v709_v7 = vsub.f32 %v2835_v31, %v2907_v18 }
  0xac   :  { %435 = vadd.xlane.f32.xlu0 %v434_v55  ;;  %v755_v40 = vsel %vm406_vm0, %v737_v33, 0.0  ;;  %v752_v45 = vsel %vm406_vm0, %v736_v47, 0.0  ;;  %v739_v49 = vmul.f32 %v2918_v29, %v719_v42  ;;  %v704_v55 = vsub.f32 %v2794_v8, %v2907_v18 }
  0xad   :  { %v738_v50 = vmul.f32 %v2918_v29, %v718_v46  ;;  %v723_v2 = vmul.f32 %v707_v61, %v707_v61  ;;  %v722_v4 = vmul.f32 %v706_v0, %v706_v0  ;;  %v708_v11 = vsub.f32 %v2844_v34, %v2907_v18 }
  0xae   :  { %432 = vadd.xlane.f32.xlu1 %v431_v57  ;;  %v761_v54 = vsel %vm406_vm0, %v739_v49, 0.0  ;;  %v721_v57 = vmul.f32 %v705_v53, %v705_v53  ;;  %v720_v58 = vmul.f32 %v704_v55, %v704_v55  ;;  %v711_v22 = vsub.f32 %v2855_v48, %v2907_v18 }
  0xaf   :  { %v758_v56 = vsel %vm406_vm0, %v738_v50, 0.0  ;;  %v743_v6 = vmul.f32 %v2918_v29, %v723_v2  ;;  %v742_v12 = vmul.f32 %v2918_v29, %v722_v4  ;;  %v710_v25 = vsub.f32 %v2863_v52, %v2907_v18 }
  0xb0   :  { %441 = vadd.xlane.f32.xlu0 %v440_v1  ;;  %v741_v60 = vmul.f32 %v2918_v29, %v721_v57  ;;  %v740_v63 = vmul.f32 %v2918_v29, %v720_v58  ;;  %v713_v33 = vsub.f32 %v2873_v59, %v2907_v18  ;;  %v712_v47 = vsub.f32 %v2881_v62, %v2907_v18 }
  0xb1   :  { %v773_v13 = vsel %vm406_vm0, %v743_v6, 0.0  ;;  %v770_v16 = vsel %vm406_vm0, %v742_v12, 0.0  ;;  %v715_v49 = vsub.f32 %v2891_v5, %v2907_v18  ;;  %v1044_v50 = vsub.s32 2, %v2578_v19 }
  0xb2   :  { %438 = vadd.xlane.f32.xlu1 %v437_v3  ;;  %v767_v1 = vsel %vm406_vm0, %v741_v60, 0.0  ;;  %v764_v3 = vsel %vm406_vm0, %v740_v63, 0.0 }
  0xb3   :  { %v2978_v57 = vrot.slane %v2622_v36, %v1044_v50 }
  0xb4   :  { %447 = vadd.xlane.f32.xlu0 %v446_v15  ;;  %v725_v15 = vmul.f32 %v709_v7, %v709_v7 }
  0xb5   :  { %v1047_v63 = vsub.f32 %v2648_v44, %v2978_v57  ;;  %v1049_v12 = vsub.f32 %v2664_v51, %v2978_v57 }
  0xb6   :  { %444 = vadd.xlane.f32.xlu1 %v443_v20  ;;  %v724_v20 = vmul.f32 %v708_v11, %v708_v11  ;;  %v745_v21 = vmul.f32 %v2918_v29, %v725_v15  ;;  %v1048_v11 = vsub.f32 %v2643_v43, %v2978_v57 }
  0xb7   :  { %v1063_v2 = vmul.f32 %v1047_v63, %v1047_v63  ;;  %v1065_v15 = vmul.f32 %v1049_v12, %v1049_v12  ;;  %v1059_v63 = vsub.f32 %v2873_v59, %v2978_v57 }
  0xb8   :  { %453 = vadd.xlane.f32.xlu0 %v452_v26  ;;  %v744_v23 = vmul.f32 %v2918_v29, %v724_v20  ;;  %v779_v37 = vsel %vm406_vm0, %v745_v21, 0.0  ;;  %v727_v26 = vmul.f32 %v711_v22, %v711_v22  ;;  %v1064_v20 = vmul.f32 %v1048_v11, %v1048_v11 }
  0xb9   :  { %v1051_v22 = vsub.f32 %v2787_v9, %v2978_v57  ;;  %v1390_v11 = vsub.s32 3, %v2578_v19 }
  0xba   :  { %450 = vadd.xlane.f32.xlu1 %v449_v27  ;;  %v776_v28 = vsel %vm406_vm0, %v744_v23, 0.0  ;;  %v726_v27 = vmul.f32 %v710_v25, %v710_v25  ;;  %v747_v32 = vmul.f32 %v2918_v29, %v727_v26  ;;  %v1050_v25 = vsub.f32 %v2794_v8, %v2978_v57 }
  0xbb   :  { %v1067_v26 = vmul.f32 %v1051_v22, %v1051_v22 }
  0xbc   :  { %756 = vadd.xlane.f32.xlu0 %v755_v40  ;;  %v746_v38 = vmul.f32 %v2918_v29, %v726_v27  ;;  %v785_v39 = vsel %vm406_vm0, %v747_v32, 0.0  ;;  %v729_v40 = vmul.f32 %v713_v33, %v713_v33  ;;  %v1066_v27 = vmul.f32 %v1050_v25, %v1050_v25 }
  0xbd   :  { %v1053_v33 = vsub.f32 %v2801_v14, %v2978_v57 }
  0xbe   :  { %753 = vadd.xlane.f32.xlu1 %v752_v45  ;;  %v782_v42 = vsel %vm406_vm0, %v746_v38, 0.0  ;;  %v728_v45 = vmul.f32 %v712_v47, %v712_v47  ;;  %v749_v46 = vmul.f32 %v2918_v29, %v729_v40  ;;  %v1052_v38 = vsub.f32 %v2809_v17, %v2978_v57 }
  0xbf   :  { %v1055_v47 = vsub.f32 %v2835_v31, %v2978_v57  ;;  %v1054_v40 = vsub.f32 %v2844_v34, %v2978_v57 }
  0xc0   :  { %762 = vadd.xlane.f32.xlu0 %v761_v54  ;;  %v748_v53 = vmul.f32 %v2918_v29, %v728_v45  ;;  %v714_v54 = vsub.f32 %v2899_v10, %v2907_v18  ;;  %v791_v55 = vsel %vm406_vm0, %v749_v46, 0.0  ;;  %v1046_v18 = vsub.f32 %v2617_v35, %v2978_v57 }
  0xc1   :  { %v1056_v45 = vsub.f32 %v2863_v52, %v2978_v57 }
  0xc2   :  { %759 = vadd.xlane.f32.xlu1 %v758_v56  ;;  %v731_v56 = vmul.f32 %v715_v49, %v715_v49  ;;  %v788_v58 = vsel %vm406_vm0, %v748_v53, 0.0  ;;  %v730_v60 = vmul.f32 %v714_v54, %v714_v54  ;;  %v1062_v6 = vmul.f32 %v1046_v18, %v1046_v18 }
  0xc3   :  { %v1069_v49 = vmul.f32 %v1053_v33, %v1053_v33  ;;  %v1071_v53 = vmul.f32 %v1055_v47, %v1055_v47  ;;  %v1072_v18 = vmul.f32 %v1056_v45, %v1056_v45  ;;  %v3057_v33 = vrot.slane %v2636_v41, %v1390_v11 }
  0xc4   :  { %768 = vadd.xlane.f32.xlu0 %v767_v1  ;;  %v751_v61 = vmul.f32 %v2918_v29, %v731_v56  ;;  %v750_v0 = vmul.f32 %v2918_v29, %v730_v60 }
  0xc6   :  { %765 = vadd.xlane.f32.xlu1 %v764_v3  ;;  %v797_v1 = vsel %vm406_vm0, %v751_v61, 0.0  ;;  %v2989_v3 = vrot.slane %v2636_v41, %v1044_v50  ;;  %v794_v4 = vsel %vm406_vm0, %v750_v0, 0.0  ;;  %v1068_v50 = vmul.f32 %v1052_v38, %v1052_v38 }
  0xc8   :  { %774 = vadd.xlane.f32.xlu0 %v773_v13  ;;  %v1083_v7 = vmul.f32 %v2989_v3, %v1063_v2  ;;  %v1082_v29 = vmul.f32 %v2989_v3, %v1062_v6  ;;  %v1085_v21 = vmul.f32 %v2989_v3, %v1065_v15  ;;  %v1084_v23 = vmul.f32 %v2989_v3, %v1064_v20 }
  0xc9   :  { %v1087_v32 = vmul.f32 %v2989_v3, %v1067_v26  ;;  %v1088_v60 = vmul.f32 %v2989_v3, %v1068_v50  ;;  %v1091_v61 = vmul.f32 %v2989_v3, %v1071_v53  ;;  %v1075_v6 = vmul.f32 %v1059_v63, %v1059_v63 }
  0xca   :  { %771 = vadd.xlane.f32.xlu1 %v770_v16  ;;  %v1101_v13 = vsel %vm406_vm0, %v1083_v7, 0.0  ;;  %v1098_v16 = vsel %vm406_vm0, %v1082_v29, 0.0  ;;  %v1061_v29 = vsub.f32 %v2891_v5, %v2978_v57  ;;  %v1092_v15 = vmul.f32 %v2989_v3, %v1072_v18 }
  0xcb   :  { %v1113_v46 = vsel %vm406_vm0, %v1087_v32, 0.0  ;;  %v1125_v7 = vsel %vm406_vm0, %v1091_v61, 0.0  ;;  %v1060_v20 = vsub.f32 %v2899_v10, %v2978_v57  ;;  %v1095_v22 = vmul.f32 %v2989_v3, %v1075_v6 }
  0xcc   :  { %780 = vadd.xlane.f32.xlu0 %v779_v37  ;;  %v1107_v37 = vsel %vm406_vm0, %v1085_v21, 0.0  ;;  %v3044_v21 = vrot.slane %v2622_v36, %v1390_v11  ;;  %v1077_v25 = vmul.f32 %v1061_v29, %v1061_v29 }
  0xcd   :  { %v1137_v36 = vsel %vm406_vm0, %v1095_v22, 0.0 }
  0xce   :  { %777 = vadd.xlane.f32.xlu1 %v776_v28  ;;  %v1104_v28 = vsel %vm406_vm0, %v1084_v23, 0.0  ;;  %v1393_v19 = vsub.f32 %v2648_v44, %v3044_v21  ;;  %v1395_v44 = vsub.f32 %v2664_v51, %v3044_v21  ;;  %v1397_v41 = vsub.f32 %v2787_v9, %v3044_v21 }
  0xcf   :  { %v1401_v63 = vsub.f32 %v2835_v31, %v3044_v21  ;;  %v1403_v6 = vsub.f32 %v2855_v48, %v3044_v21  ;;  %v1402_v29 = vsub.f32 %v2863_v52, %v3044_v21  ;;  %v1404_v22 = vsub.f32 %v2881_v62, %v3044_v21 }
  0xd0   :  { %786 = vadd.xlane.f32.xlu0 %v785_v39  ;;  %v1086_v39 = vmul.f32 %v2989_v3, %v1066_v27  ;;  %v1097_v27 = vmul.f32 %v2989_v3, %v1077_v25  ;;  %v1409_v32 = vmul.f32 %v1393_v19, %v1393_v19  ;;  %v1411_v45 = vmul.f32 %v1395_v44, %v1395_v44 }
  0xd1   :  { %v1413_v53 = vmul.f32 %v1397_v41, %v1397_v41  ;;  %v1407_v19 = vsub.f32 %v2891_v5, %v3044_v21 }
  0xd2   :  { %783 = vadd.xlane.f32.xlu1 %v782_v42  ;;  %v1057_v42 = vsub.f32 %v2855_v48, %v2978_v57  ;;  %v1110_v54 = vsel %vm406_vm0, %v1086_v39, 0.0  ;;  %v1431_v50 = vmul.f32 %v3057_v33, %v1411_v45 }
  0xd4   :  { %792 = vadd.xlane.f32.xlu0 %v791_v55  ;;  %v1070_v55 = vmul.f32 %v1054_v40, %v1054_v40  ;;  %v1073_v56 = vmul.f32 %v1057_v42, %v1057_v42  ;;  %v1143_v40 = vsel %vm406_vm0, %v1097_v27, 0.0  ;;  %v1429_v42 = vmul.f32 %v3057_v33, %v1409_v32 }
  0xd6   :  { %789 = vadd.xlane.f32.xlu1 %v788_v58  ;;  %v1089_v58 = vmul.f32 %v2989_v3, %v1069_v49  ;;  %v1090_v0 = vmul.f32 %v2989_v3, %v1070_v55  ;;  %v1093_v12 = vmul.f32 %v2989_v3, %v1073_v56 }
  0xd8   :  { %798 = vadd.xlane.f32.xlu0 %v797_v1  ;;  %v1058_v1 = vsub.f32 %v2881_v62, %v2978_v57  ;;  %v1119_v2 = vsel %vm406_vm0, %v1089_v58, 0.0  ;;  %v1131_v23 = vsel %vm406_vm0, %v1093_v12, 0.0  ;;  %v1392_v57 = vsub.f32 %v2617_v35, %v3044_v21 }
  0xd9   :  { %v1394_v35 = vsub.f32 %v2643_v43, %v3044_v21  ;;  %v1447_v43 = vsel %vm406_vm0, %v1429_v42, 0.0  ;;  %v1398_v58 = vsub.f32 %v2809_v17, %v3044_v21  ;;  %v1821_v42 = vld [vmem:[%s3577_s3 + $0x198] sm:$0xff] }
  0xda   :  { %795 = vadd.xlane.f32.xlu1 %v794_v4  ;;  %v1116_v4 = vsel %vm406_vm0, %v1088_v60, 0.0  ;;  %v1408_v39 = vmul.f32 %v1392_v57, %v1392_v57  ;;  %v1433_v60 = vmul.f32 %v3057_v33, %v1413_v53 }
  0xdb   :  { %v1410_v49 = vmul.f32 %v1394_v35, %v1394_v35  ;;  %v1414_v18 = vmul.f32 %v1398_v58, %v1398_v58  ;;  %v1804_v35 = vld [vmem:[%s3577_s3 + $0x110] sm:$0xff]  ;;  %v1825_v58 = vld [vmem:[%s3577_s3 + $0x1b8] sm:$0xff] }
  0xdc   :  { %1102 = vadd.xlane.f32.xlu0 %v1101_v13  ;;  %v1122_v13 = vsel %vm406_vm0, %v1090_v0, 0.0  ;;  %v1459_v17 = vsel %vm406_vm0, %v1433_v60, 0.0 }
  0xdd   :  { %v1430_v55 = vmul.f32 %v3057_v33, %v1410_v49  ;;  %v1806_v49 = vld [vmem:[%s3577_s3 + $0x120] sm:$0xff] }
  0xde   :  { %1099 = vadd.xlane.f32.xlu1 %v1098_v16  ;;  %v1074_v16 = vmul.f32 %v1058_v1, %v1058_v1  ;;  %v1400_v1 = vsub.f32 %v2844_v34, %v3044_v21 }
  0xe0   :  { %1108 = vadd.xlane.f32.xlu0 %v1107_v37  ;;  %v1128_v37 = vsel %vm406_vm0, %v1092_v15, 0.0  ;;  %v1094_v26 = vmul.f32 %v2989_v3, %v1074_v16  ;;  %v1416_v12 = vmul.f32 %v1400_v1, %v1400_v1  ;;  %v1405_v15 = vsub.f32 %v2873_v59, %v3044_v21  ;;  %v1827_v1 = vld [vmem:[%s3577_s3 + $0x1c8] sm:$0xff] }
  0xe2   :  { %1105 = vadd.xlane.f32.xlu1 %v1104_v28  ;;  %v1076_v28 = vmul.f32 %v1060_v20, %v1060_v20  ;;  %v1134_v38 = vsel %vm406_vm0, %v1094_v26, 0.0  ;;  %v1436_v16 = vmul.f32 %v3057_v33, %v1416_v12  ;;  %v1418_v20 = vmul.f32 %v1402_v29, %v1402_v29  ;;  %v1828_v12 = vld [vmem:[%s3577_s3 + $0x1d0] sm:$0xff]  ;;  %v1829_v29 = vld [vmem:[%s3577_s3 + $0x1d8] sm:$0xff] }
  0xe3   :  { %v1421_v25 = vmul.f32 %v1405_v15, %v1405_v15  ;;  %v1420_v26 = vmul.f32 %v1404_v22, %v1404_v22  ;;  %v2345_v15 = vpack.c.bf16 %v1829_v29, %v1828_v12  ;;  %v1831_v22 = vld [vmem:[%s3577_s3 + $0x1e8] sm:$0xff] }
  0xe4   :  { %1114 = vadd.xlane.f32.xlu0 %v1113_v46  ;;  %v1096_v47 = vmul.f32 %v2989_v3, %v1076_v28  ;;  %v1428_v46 = vmul.f32 %v3057_v33, %v1408_v39  ;;  %v1396_v3 = vsub.f32 %v2794_v8, %v3044_v21  ;;  %v1453_v8 = vsel %vm406_vm0, %v1431_v50, 0.0  ;;  %v1823_v50 = vld [vmem:[%s3577_s3 + $0x1a8] sm:$0xff] }
  0xe5   :  { %v1468_v59 = vsel %vm406_vm0, %v1436_v16, 0.0  ;;  %v1406_v28 = vsub.f32 %v2899_v10, %v3044_v21  ;;  %v1441_v57 = vmul.f32 %v3057_v33, %v1421_v25  ;;  %v1440_v32 = vmul.f32 %v3057_v33, %v1420_v26  ;;  %v1815_v16 = vld [vmem:[%s3577_s3 + $0x168] sm:$0xff]  ;;  %v1832_v26 = vld [vmem:[%s3577_s3 + $0x1f0] sm:$0xff] }
  0xe6   :  { %1111 = vadd.xlane.f32.xlu1 %v1110_v54  ;;  %v1140_v51 = vsel %vm406_vm0, %v1096_v47, 0.0  ;;  %v1399_v54 = vsub.f32 %v2801_v14, %v3044_v21  ;;  %v1444_v9 = vsel %vm406_vm0, %v1428_v46, 0.0  ;;  %v1412_v56 = vmul.f32 %v1396_v3, %v1396_v3  ;;  %v1807_v3 = vld [vmem:[%s3577_s3 + $0x128] sm:$0xff] }
  0xe7   :  { %v1450_v14 = vsel %vm406_vm0, %v1430_v55, 0.0  ;;  %v1422_v5 = vmul.f32 %v1406_v28, %v1406_v28  ;;  %v1483_v44 = vsel %vm406_vm0, %v1441_v57, 0.0  ;;  %v1480_v10 = vsel %vm406_vm0, %v1440_v32, 0.0  ;;  %v1833_v28 = vld [vmem:[%s3577_s3 + $0x1f8] sm:$0xff] }
  0xe8   :  { %1120 = vadd.xlane.f32.xlu0 %v1119_v2  ;;  %v1415_v61 = vmul.f32 %v1399_v54, %v1399_v54  ;;  %v1432_v0 = vmul.f32 %v3057_v33, %v1412_v56  ;;  %v1808_v56 = vld [vmem:[%s3577_s3 + $0x130] sm:$0xff] }
  0xe9   :  { %v1442_v21 = vmul.f32 %v3057_v33, %v1422_v5 }
  0xea   :  { %1117 = vadd.xlane.f32.xlu1 %v1116_v4  ;;  %v1435_v2 = vmul.f32 %v3057_v33, %v1415_v61  ;;  %v1417_v4 = vmul.f32 %v1401_v63, %v1401_v63  ;;  %v1456_v31 = vsel %vm406_vm0, %v1432_v0, 0.0  ;;  %v1811_v0 = vld [vmem:[%s3577_s3 + $0x148] sm:$0xff] }
  0xeb   :  { %v1486_v39 = vsel %vm406_vm0, %v1442_v21, 0.0  ;;  %v412_v21 = vpop.xlane.xlu1 %411 }
  0xec   :  { %1126 = vadd.xlane.f32.xlu0 %v1125_v7  ;;  %v1434_v7 = vmul.f32 %v3057_v33, %v1414_v18  ;;  %v1465_v34 = vsel %vm406_vm0, %v1435_v2, 0.0  ;;  %v1437_v11 = vmul.f32 %v3057_v33, %v1417_v4  ;;  %v1826_v18 = vld [vmem:[%s3577_s3 + $0x1c0] sm:$0xff] }
  0xee   :  { %1123 = vadd.xlane.f32.xlu1 %v1122_v13  ;;  %v1419_v13 = vmul.f32 %v1403_v6, %v1403_v6  ;;  %v1462_v48 = vsel %vm406_vm0, %v1434_v7, 0.0  ;;  %v1471_v52 = vsel %vm406_vm0, %v1437_v11, 0.0  ;;  %v2341_v6 = vpack.c.bf16 %v1827_v1, %v1826_v18  ;;  %v1813_v7 = vld [vmem:[%s3577_s3 + $0x158] sm:$0xff] }
  0xf0   :  { %1132 = vadd.xlane.f32.xlu0 %v1131_v23  ;;  %v1439_v23 = vmul.f32 %v3057_v33, %v1419_v13 }
  0xf2   :  { %1129 = vadd.xlane.f32.xlu1 %v1128_v37  ;;  %v1438_v37 = vmul.f32 %v3057_v33, %v1418_v20  ;;  %v1477_v62 = vsel %vm406_vm0, %v1439_v23, 0.0  ;;  %v1830_v20 = vld [vmem:[%s3577_s3 + $0x1e0] sm:$0xff] }
  0xf4   :  { %1138 = vadd.xlane.f32.xlu0 %v1137_v36  ;;  %v1423_v36 = vmul.f32 %v1407_v19, %v1407_v19  ;;  %v1474_v27 = vsel %vm406_vm0, %v1438_v37, 0.0  ;;  %v2349_v19 = vpack.c.bf16 %v1831_v22, %v1830_v20  ;;  %v1817_v37 = vld [vmem:[%s3577_s3 + $0x178] sm:$0xff] }
  0xf6   :  { %1135 = vadd.xlane.f32.xlu1 %v1134_v38  ;;  %v1443_v38 = vmul.f32 %v3057_v33, %v1423_v36  ;;  %v1820_v33 = vld [vmem:[%s3577_s3 + $0x190] sm:$0xff] }
  0xf7   :  { %v2329_v46 = vpack.c.bf16 %v1821_v42, %v1820_v33 }
  0xf8   :  { %1144 = vadd.xlane.f32.xlu0 %v1143_v40  ;;  %v1489_v47 = vsel %vm406_vm0, %v1443_v38, 0.0  ;;  %v1805_v40 = vld [vmem:[%s3577_s3 + $0x118] sm:$0xff] }
  0xfa   :  { %1141 = vadd.xlane.f32.xlu1 %v1140_v51  ;;  %v2297_v51 = vpack.c.bf16 %v1805_v40, %v1804_v35 }
  0xfc   :  { %1448 = vadd.xlane.f32.xlu0 %v1447_v43  ;;  %v1822_v43 = vld [vmem:[%s3577_s3 + $0x1a0] sm:$0xff] }
  0xfd   :  { %v2333_v55 = vpack.c.bf16 %v1823_v50, %v1822_v43 }
  0xfe   :  { %1445 = vadd.xlane.f32.xlu1 %v1444_v9  ;;  %v2301_v9 = vpack.c.bf16 %v1807_v3, %v1806_v49 }
 0x100   :  { %1454 = vadd.xlane.f32.xlu0 %v1453_v8 }
 0x102   :  { %1451 = vadd.xlane.f32.xlu1 %v1450_v14  ;;  %v1810_v14 = vld [vmem:[%s3577_s3 + $0x140] sm:$0xff] }
 0x103   :  { %v2309_v4 = vpack.c.bf16 %v1811_v0, %v1810_v14 }
 0x104   :  { %1460 = vadd.xlane.f32.xlu0 %v1459_v17 }
 0x106   :  { %1457 = vadd.xlane.f32.xlu1 %v1456_v31  ;;  %v1812_v31 = vld [vmem:[%s3577_s3 + $0x150] sm:$0xff] }
 0x107   :  { %v2313_v13 = vpack.c.bf16 %v1813_v7, %v1812_v31 }
 0x108   :  { %1466 = vadd.xlane.f32.xlu0 %v1465_v34 }
 0x10a   :  { %1463 = vadd.xlane.f32.xlu1 %v1462_v48  ;;  %v1814_v48 = vld [vmem:[%s3577_s3 + $0x160] sm:$0xff] }
 0x10b   :  { %v2317_v25 = vpack.c.bf16 %v1815_v16, %v1814_v48 }
 0x10c   :  { %1472 = vadd.xlane.f32.xlu0 %v1471_v52 }
 0x10e   :  { %1469 = vadd.xlane.f32.xlu1 %v1468_v59  ;;  %v1816_v59 = vld [vmem:[%s3577_s3 + $0x170] sm:$0xff] }
 0x10f   :  { %v2321_v36 = vpack.c.bf16 %v1817_v37, %v1816_v59 }
 0x110   :  { %1478 = vadd.xlane.f32.xlu0 %v1477_v62 }
 0x112   :  { %1475 = vadd.xlane.f32.xlu1 %v1474_v27  ;;  %v2353_v27 = vpack.c.bf16 %v1833_v28, %v1832_v26 }
 0x114   :  { %1484 = vadd.xlane.f32.xlu0 %v1483_v44  ;;  %v409_v44 = vpop.xlane.xlu0 %408 }
 0x116   :  { %1481 = vadd.xlane.f32.xlu1 %v1480_v10 }
 0x118   :  { %1490 = vadd.xlane.f32.xlu0 %v1489_v47  ;;  %v415_v38 = vpop.xlane.xlu0 %414 }
 0x11a   :  { %1487 = vadd.xlane.f32.xlu1 %v1486_v39 }
 0x11c   :  { %v418_v10 = vpop.xlane.xlu0 %417 }
 0x131   :  { %v424_v47 = vpop.xlane.xlu0 %423 }
 0x132   :  { %v460_v22 = vmul.f32 -0.5, %v424_v47 }
 0x133   :  { %v421_v39 = vpop.xlane.xlu1 %420 }
 0x134   :  { %v481_v26 = vmul.f32 1.442695, %v460_v22 }
 0x135   :  { %v430_v35 = vpop.xlane.xlu0 %429 }
 0x137   :  { %v427_v40 = vpop.xlane.xlu1 %426 }
 0x138   :  { %v461_v37 = vmul.f32 -0.5, %v427_v40 }
 0x139   :  { %v436_v33 = vpop.xlane.xlu0 %435 }
 0x13a   :  { %v464_v28 = vmul.f32 -0.5, %v436_v33 }
 0x13b   :  { %v433_v42 = vpop.xlane.xlu1 %432 }
 0x15b   :  { %v3135_v45 = vpop.f32.mrb[0].mxu0 }
 0x15c   :  { %v3137_v41 = vpop.f32.mrb[1].mxu0 }
 0x15d   :  { %2037 = vmatprep.mubr.f32.mxu1 %v3137_v41  ;;  %2093 = vmatprep.mubr.f32.mxu0 %v3137_v41 }
 0x15e   :  { %2038 = vmatmul.mubr.f32.vlgmr.msra.gmra.mrb[0].mxu1 %v3135_v45  ;;  %2094 = vmatmul.mubr.f32.vlgmr.msra.gmra.mrb[16].mxu0 %v3135_v45 }
 0x15f   :  { %2296 = vmatpush3.bf16.msra.mxu1 %v2823_v24  ;;  %v3156_v53 = vpop.f32.mrb[2].mxu0  ;;  %2328 = vmatpush3.bf16.msra.mxu0 %v2830_v30  ;;  %v1809_v24 = vld [vmem:[%s3577_s3 + $0x138] sm:$0xff]  ;;  %v1824_v30 = vld [vmem:[%s3577_s3 + $0x1b0] sm:$0xff] }
 0x160   :  { %v3159_v54 = vpop.f32.mrb[3].mxu0  ;;  %2298 = vmatprep.subr.bf16.mxu1 %v2297_v51  ;;  %2330 = vmatprep.subr.bf16.mxu0 %v2329_v46  ;;  %v2305_v61 = vpack.c.bf16 %v1809_v24, %v1808_v56  ;;  %v2337_v63 = vpack.c.bf16 %v1825_v58, %v1824_v30 }
 0x161   :  { %2040 = vmatprep.mubr.f32.mxu1 %v3159_v54  ;;  %2096 = vmatprep.mubr.f32.mxu0 %v3159_v54 }
 0x162   :  { %2041 = vmatmul.mubr.f32.gmra.mrb[2].mxu1 %v3156_v53  ;;  %2097 = vmatmul.mubr.f32.gmra.mrb[18].mxu0 %v3156_v53 }
 0x163   :  { %2300 = vmatpush3.bf16.msra.mxu1 %v2297_v51  ;;  %v3177_v8 = vpop.f32.mrb[4].mxu0  ;;  %2332 = vmatpush3.bf16.msra.mxu0 %v2329_v46 }
 0x164   :  { %v3179_v60 = vpop.f32.mrb[5].mxu0  ;;  %2302 = vmatprep.subr.bf16.mxu1 %v2301_v9  ;;  %2334 = vmatprep.subr.bf16.mxu0 %v2333_v55 }
 0x165   :  { %2043 = vmatprep.mubr.f32.mxu1 %v3179_v60  ;;  %2099 = vmatprep.mubr.f32.mxu0 %v3179_v60 }
 0x166   :  { %2044 = vmatmul.mubr.f32.gmra.mrb[4].mxu1 %v3177_v8  ;;  %2100 = vmatmul.mubr.f32.gmra.mrb[20].mxu0 %v3177_v8 }
 0x167   :  { %2304 = vmatpush3.bf16.msra.mxu1 %v2301_v9  ;;  %v3197_v17 = vpop.f32.mrb[6].mxu0  ;;  %2336 = vmatpush3.bf16.msra.mxu0 %v2333_v55 }
 0x168   :  { %v3199_v2 = vpop.f32.mrb[7].mxu0  ;;  %2306 = vmatprep.subr.bf16.mxu1 %v2305_v61  ;;  %2338 = vmatprep.subr.bf16.mxu0 %v2337_v63 }
 0x169   :  { %2046 = vmatprep.mubr.f32.mxu1 %v3199_v2  ;;  %2102 = vmatprep.mubr.f32.mxu0 %v3199_v2 }
 0x16a   :  { %2047 = vmatmul.mubr.f32.gmra.mrb[6].mxu1 %v3197_v17  ;;  %2103 = vmatmul.mubr.f32.gmra.mrb[22].mxu0 %v3197_v17 }
 0x16b   :  { %2308 = vmatpush3.bf16.msra.mxu1 %v2305_v61  ;;  %v3217_v34 = vpop.f32.mrb[8].mxu0  ;;  %2340 = vmatpush3.bf16.msra.mxu0 %v2337_v63 }
 0x16c   :  { %v3219_v11 = vpop.f32.mrb[9].mxu0  ;;  %2310 = vmatprep.subr.bf16.mxu1 %v2309_v4  ;;  %2342 = vmatprep.subr.bf16.mxu0 %v2341_v6 }
 0x16d   :  { %2049 = vmatprep.mubr.f32.mxu1 %v3219_v11  ;;  %2105 = vmatprep.mubr.f32.mxu0 %v3219_v11 }
 0x16e   :  { %2050 = vmatmul.mubr.f32.gmra.mrb[8].mxu1 %v3217_v34  ;;  %2106 = vmatmul.mubr.f32.gmra.mrb[24].mxu0 %v3217_v34 }
 0x16f   :  { %2312 = vmatpush3.bf16.msra.mxu1 %v2309_v4  ;;  %v1998_v52 = vpop.f32.mrb[10].mxu0  ;;  %2344 = vmatpush3.bf16.msra.mxu0 %v2341_v6 }
 0x170   :  { %v303_v23 = vpop.f32.mrb[11].mxu0  ;;  %2314 = vmatprep.subr.bf16.mxu1 %v2313_v13  ;;  %2346 = vmatprep.subr.bf16.mxu0 %v2345_v15 }
 0x171   :  { %2052 = vmatprep.mubr.f32.mxu1 %v303_v23  ;;  %2108 = vmatprep.mubr.f32.mxu0 %v303_v23 }
 0x172   :  { %2053 = vmatmul.mubr.f32.gmra.mrb[10].mxu1 %v1998_v52  ;;  %2109 = vmatmul.mubr.f32.gmra.mrb[26].mxu0 %v1998_v52 }
 0x173   :  { %2316 = vmatpush3.bf16.msra.mxu1 %v2313_v13  ;;  %v2001_v62 = vpop.f32.mrb[12].mxu0  ;;  %2348 = vmatpush3.bf16.msra.mxu0 %v2345_v15  ;;  %v458_v13 = vmul.f32 -0.5, %v418_v10  ;;  %v456_v15 = vmul.f32 -0.5, %v412_v21  ;;  %v489_v10 = vmul.f32 1.442695, %v464_v28 }
 0x174   :  { %v313_v57 = vpop.f32.mrb[13].mxu0  ;;  %2318 = vmatprep.subr.bf16.mxu1 %v2317_v25  ;;  %2350 = vmatprep.subr.bf16.mxu0 %v2349_v19 }
 0x175   :  { %2055 = vmatprep.mubr.f32.mxu1 %v313_v57  ;;  %2111 = vmatprep.mubr.f32.mxu0 %v313_v57  ;;  %v473_v59 = vmul.f32 1.442695, %v456_v15 }
 0x176   :  { %2056 = vmatmul.mubr.f32.gmra.mrb[12].mxu1 %v2001_v62  ;;  %2112 = vmatmul.mubr.f32.gmra.mrb[28].mxu0 %v2001_v62 }
 0x177   :  { %2320 = vmatpush3.bf16.msra.mxu1 %v2317_v25  ;;  %v2004_v32 = vpop.f32.mrb[14].mxu0  ;;  %2352 = vmatpush3.bf16.msra.mxu0 %v2349_v19  ;;  %v477_v25 = vmul.f32 1.442695, %v458_v13  ;;  %v462_v19 = vmul.f32 -0.5, %v430_v35 }
 0x178   :  { %v323_v5 = vpop.f32.mrb[15].mxu0  ;;  %2322 = vmatprep.subr.bf16.mxu1 %v2321_v36  ;;  %2354 = vmatprep.subr.bf16.mxu0 %v2353_v27 }
 0x179   :  { %2058 = vmatprep.mubr.f32.mxu1 %v323_v5  ;;  %2114 = vmatprep.mubr.f32.mxu0 %v323_v5 }
 0x17a   :  { %2059 = vmatmul.mubr.f32.gmra.mrb[14].mxu1 %v2004_v32  ;;  %2115 = vmatmul.mubr.f32.gmra.mrb[30].mxu0 %v2004_v32 }
 0x17b   :  { %2324 = vmatpush3.bf16.msra.mxu1 %v2321_v36  ;;  %2149 = vmatprep.mubr.f32.mxu1 %v3137_v41 }
 0x17c   :  { %2356 = vmatpush3.bf16.msra.mxu0 %v2353_v27  ;;  %2205 = vmatprep.mubr.f32.mxu0 %v3137_v41  ;;  %v439_v41 = vpop.xlane.xlu1 %438 }
 0x17e   :  { %2150 = vmatmul.mubr.f32.vlgmr.msra.gmra.mrb[16].mxu1 %v3135_v45 }
 0x17f   :  { %2206 = vmatmul.mubr.f32.vlgmr.msra.gmra.mrb[32].mxu0 %v3135_v45  ;;  %2152 = vmatprep.mubr.f32.mxu1 %v3159_v54  ;;  %v442_v45 = vpop.xlane.xlu0 %441 }
 0x180   :  { %2208 = vmatprep.mubr.f32.mxu0 %v3159_v54  ;;  %v3271_v46 = vpop.xlane.xlu1 %444 }
 0x182   :  { %2153 = vmatmul.mubr.f32.gmra.mrb[18].mxu1 %v3156_v53 }
 0x183   :  { %2209 = vmatmul.mubr.f32.gmra.mrb[34].mxu0 %v3156_v53  ;;  %2155 = vmatprep.mubr.f32.mxu1 %v3179_v60  ;;  %v3269_v51 = vpop.xlane.xlu0 %447 }
 0x184   :  { %2211 = vmatprep.mubr.f32.mxu0 %v3179_v60  ;;  %v3275_v3 = vpop.xlane.xlu1 %450  ;;  %v468_v40 = vmul.f32 -0.5, %v3269_v51 }
 0x185   :  { %v469_v22 = vmul.f32 -0.5, %v3275_v3 }
 0x186   :  { %2156 = vmatmul.mubr.f32.gmra.mrb[20].mxu1 %v3177_v8  ;;  %v497_v51 = vmul.f32 1.442695, %v468_v40 }
 0x187   :  { %2212 = vmatmul.mubr.f32.gmra.mrb[36].mxu0 %v3177_v8  ;;  %2158 = vmatprep.mubr.f32.mxu1 %v3199_v2  ;;  %v3273_v49 = vpop.xlane.xlu0 %453 }
 0x188   :  { %2214 = vmatprep.mubr.f32.mxu0 %v3199_v2  ;;  %v754_v50 = vpop.xlane.xlu1 %753  ;;  %v470_v15 = vmul.f32 -0.5, %v3273_v49 }
 0x18a   :  { %2159 = vmatmul.mubr.f32.gmra.mrb[22].mxu1 %v3197_v17 }
 0x18b   :  { %2215 = vmatmul.mubr.f32.gmra.mrb[38].mxu0 %v3197_v17  ;;  %2161 = vmatprep.mubr.f32.mxu1 %v3219_v11  ;;  %v757_v43 = vpop.xlane.xlu0 %756 }
 0x18c   :  { %2217 = vmatprep.mubr.f32.mxu0 %v3219_v11  ;;  %v3279_v54 = vpop.xlane.xlu1 %759  ;;  %v457_v11 = vmul.f32 -0.5, %v415_v38  ;;  %v465_v38 = vmul.f32 -0.5, %v439_v41  ;;  %v801_v21 = vmul.f32 -0.5, %v757_v43 }
 0x18e   :  { %2162 = vmatmul.mubr.f32.gmra.mrb[24].mxu1 %v3217_v34  ;;  %v491_v33 = vmul.f32 1.442695, %v465_v38  ;;  %v818_v41 = vmul.f32 1.442695, %v801_v21 }
 0x18f   :  { %2218 = vmatmul.mubr.f32.gmra.mrb[40].mxu0 %v3217_v34  ;;  %2164 = vmatprep.mubr.f32.mxu1 %v303_v23  ;;  %v3277_v53 = vpop.xlane.xlu0 %762  ;;  %v455_v34 = vmul.f32 -0.5, %v409_v44  ;;  %v483_v44 = vmul.f32 1.442695, %v461_v37 }
 0x190   :  { %2220 = vmatprep.mubr.f32.mxu0 %v303_v23  ;;  %v3283_v55 = vpop.xlane.xlu1 %765  ;;  %v459_v23 = vmul.f32 -0.5, %v421_v39  ;;  %v800_v39 = vmul.f32 -0.5, %v754_v50  ;;  %v802_v50 = vmul.f32 -0.5, %v3279_v54 }
 0x191   :  { %v471_v20 = vmul.f32 1.442695, %v455_v34 }
 0x192   :  { %2165 = vmatmul.mubr.f32.gmra.mrb[26].mxu1 %v1998_v52  ;;  %v816_v43 = vmul.f32 1.442695, %v800_v39  ;;  %v820_v54 = vmul.f32 1.442695, %v802_v50 }
 0x193   :  { %2221 = vmatmul.mubr.f32.gmra.mrb[42].mxu0 %v1998_v52  ;;  %2167 = vmatprep.mubr.f32.mxu1 %v313_v57  ;;  %v3281_v9 = vpop.xlane.xlu0 %768  ;;  %v475_v52 = vmul.f32 1.442695, %v457_v11  ;;  %2361 = vpow2.f32 %v471_v20  ;;  %v803_v11 = vmul.f32 -0.5, %v3277_v53 }
 0x194   :  { %2223 = vmatprep.mubr.f32.mxu0 %v313_v57  ;;  %v3287_v24 = vpop.xlane.xlu1 %771  ;;  %v463_v57 = vmul.f32 -0.5, %v433_v42  ;;  %v467_v42 = vmul.f32 -0.5, %v3271_v46 }
 0x195   :  { %2363 = vpow2.f32 %v475_v52  ;;  %v822_v53 = vmul.f32 1.442695, %v803_v11 }
 0x196   :  { %2168 = vmatmul.mubr.f32.gmra.mrb[28].mxu1 %v2001_v62  ;;  %2365 = vpow2.f32 %v477_v25  ;;  %v487_v47 = vmul.f32 1.442695, %v463_v57  ;;  %v495_v46 = vmul.f32 1.442695, %v467_v42 }
 0x197   :  { %2224 = vmatmul.mubr.f32.gmra.mrb[44].mxu0 %v2001_v62  ;;  %2170 = vmatprep.mubr.f32.mxu1 %v323_v5  ;;  %v3285_v56 = vpop.xlane.xlu0 %774  ;;  %v479_v62 = vmul.f32 1.442695, %v459_v23  ;;  %2367 = vpow2.f32 %v473_v59  ;;  %v805_v23 = vmul.f32 -0.5, %v3281_v9 }
 0x198   :  { %2226 = vmatprep.mubr.f32.mxu0 %v323_v5  ;;  %v3291_v58 = vpop.xlane.xlu1 %777  ;;  %v466_v5 = vmul.f32 -0.5, %v442_v45  ;;  %2369 = vpow2.f32 %v481_v26  ;;  %v501_v26 = vmul.f32 1.442695, %v470_v15  ;;  %v807_v3 = vmul.f32 -0.5, %v3285_v56 }
 0x199   :  { %2371 = vpow2.f32 %v479_v62  ;;  %v499_v62 = vmul.f32 1.442695, %v469_v22  ;;  %v826_v57 = vmul.f32 1.442695, %v805_v23 }
 0x19a   :  { %2171 = vmatmul.mubr.f32.gmra.mrb[30].mxu1 %v2004_v32  ;;  %v493_v35 = vmul.f32 1.442695, %v466_v5  ;;  %v830_v56 = vmul.f32 1.442695, %v807_v3 }
 0x19b   :  { %2227 = vmatmul.mubr.f32.gmra.mrb[46].mxu0 %v2004_v32  ;;  %v3289_v30 = vpop.xlane.xlu0 %780  ;;  %v485_v32 = vmul.f32 1.442695, %v462_v19  ;;  %v804_v19 = vmul.f32 -0.5, %v3283_v55  ;;  %v806_v55 = vmul.f32 -0.5, %v3287_v24 }
 0x19c   :  { %v3295_v60 = vpop.xlane.xlu1 %783 }
 0x19d   :  { %2373 = vpow2.f32 %v485_v32  ;;  %v3341_v13 = vpop.eup %2361  ;;  %v824_v5 = vmul.f32 1.442695, %v804_v19  ;;  %v828_v40 = vmul.f32 1.442695, %v806_v55  ;;  %v810_v42 = vmul.f32 -0.5, %v3295_v60 }
 0x19e   :  { %2375 = vpow2.f32 %v483_v44  ;;  %v809_v44 = vmul.f32 -0.5, %v3289_v30 }
 0x19f   :  { %v3293_v8 = vpop.xlane.xlu0 %786  ;;  %2377 = vpow2.f32 %v489_v10  ;;  %v3344_v20 = vpop.eup %2363  ;;  %v808_v10 = vmul.f32 -0.5, %v3291_v58 }
 0x1a0   :  { %v3299_v63 = vpop.xlane.xlu1 %789  ;;  %2379 = vpow2.f32 %v487_v47  ;;  %v3347_v52 = vpop.eup %2365  ;;  %v811_v47 = vmul.f32 -0.5, %v3293_v8 }
 0x1a1   :  { %2381 = vpow2.f32 %v493_v35  ;;  %v2368_v25 = vpop.eup %2367  ;;  %v812_v15 = vmul.f32 -0.5, %v3299_v63 }
 0x1a2   :  { %2383 = vpow2.f32 %v491_v33  ;;  %v3355_v37 = vpop.eup %2369  ;;  %v834_v33 = vmul.f32 1.442695, %v809_v44 }
 0x1a3   :  { %v3297_v61 = vpop.xlane.xlu0 %792  ;;  %2385 = vpow2.f32 %v818_v41  ;;  %v3358_v28 = vpop.eup %2371  ;;  %v832_v41 = vmul.f32 1.442695, %v808_v10 }
 0x1a4   :  { %v3303_v0 = vpop.xlane.xlu1 %795  ;;  %2387 = vpow2.f32 %v816_v43  ;;  %v813_v11 = vmul.f32 -0.5, %v3297_v61  ;;  %v836_v61 = vmul.f32 1.442695, %v810_v42 }
 0x1a5   :  { %2389 = vpow2.f32 %v497_v51  ;;  %v838_v51 = vmul.f32 1.442695, %v811_v47  ;;  %v840_v47 = vmul.f32 1.442695, %v812_v15 }
 0x1a6   :  { %2391 = vpow2.f32 %v495_v46 }
 0x1a7   :  { %v3301_v14 = vpop.xlane.xlu0 %798  ;;  %v3360_v9 = vpop.eup %2373  ;;  %2393 = vpow2.f32 %v822_v53 }
 0x1a8   :  { %v3307_v1 = vpop.xlane.xlu1 %1099  ;;  %v3363_v32 = vpop.eup %2375  ;;  %2395 = vpow2.f32 %v820_v54  ;;  %v815_v60 = vmul.f32 -0.5, %v3301_v14 }
 0x1a9   :  { %v3366_v38 = vpop.eup %2377  ;;  %2397 = vpow2.f32 %v501_v26 }
 0x1aa   :  { %v3369_v21 = vpop.eup %2379  ;;  %2399 = vpow2.f32 %v499_v62  ;;  %v814_v62 = vmul.f32 -0.5, %v3303_v0 }
 0x1ab   :  { %v3305_v18 = vpop.xlane.xlu0 %1102  ;;  %v3376_v35 = vpop.eup %2381  ;;  %2401 = vpow2.f32 %v826_v57 }
 0x1ac   :  { %v3311_v2 = vpop.xlane.xlu1 %1105  ;;  %v3378_v30 = vpop.eup %2383  ;;  %2403 = vpow2.f32 %v824_v5  ;;  %v842_v5 = vmul.f32 1.442695, %v813_v11  ;;  %v1147_v14 = vmul.f32 -0.5, %v3305_v18 }
 0x1ad   :  { %v2386_v58 = vpop.eup %2385  ;;  %2405 = vpow2.f32 %v830_v56 }
 0x1ae   :  { %v2388_v50 = vpop.eup %2387  ;;  %2407 = vpow2.f32 %v828_v40 }
 0x1af   :  { %v3309_v17 = vpop.xlane.xlu0 %1108  ;;  %v3383_v54 = vpop.eup %2389  ;;  %2409 = vpow2.f32 %v834_v33 }
 0x1b0   :  { %v3315_v6 = vpop.xlane.xlu1 %1111  ;;  %v3387_v3 = vpop.eup %2391  ;;  %2411 = vpow2.f32 %v832_v41  ;;  %v1146_v41 = vmul.f32 -0.5, %v3307_v1 }
 0x1b1   :  { %v2394_v55 = vpop.eup %2393  ;;  %2413 = vpow2.f32 %v838_v51  ;;  %v1149_v51 = vmul.f32 -0.5, %v3309_v17 }
 0x1b2   :  { %v2396_v10 = vpop.eup %2395  ;;  %2415 = vpow2.f32 %v836_v61 }
 0x1b3   :  { %v3313_v4 = vpop.xlane.xlu0 %1114  ;;  %2417 = vpow2.f32 %v842_v5 }
 0x1b4   :  { %v3319_v7 = vpop.xlane.xlu1 %1117  ;;  %2419 = vpow2.f32 %v840_v47 }
 0x1b7   :  { %v3317_v31 = vpop.xlane.xlu0 %1120 }
 0x1b8   :  { %v3323_v29 = vpop.xlane.xlu1 %1123 }
 0x1bb   :  { %v3321_v12 = vpop.xlane.xlu0 %1126 }
 0x1bc   :  { %v3327_v16 = vpop.xlane.xlu1 %1129 }
 0x1bf   :  { %v3325_v48 = vpop.xlane.xlu0 %1132 }
 0x1c0   :  { %v3331_v27 = vpop.xlane.xlu1 %1135 }
 0x1c3   :  { %v3329_v36 = vpop.xlane.xlu0 %1138 }
 0x1c4   :  { %v3337_v45 = vpop.xlane.xlu1 %1141 }
 0x1c7   :  { %v3335_v34 = vpop.xlane.xlu0 %1144 }
 0x1c8   :  { %v3353_v49 = vpop.xlane.xlu1 %1445 }
 0x1cb   :  { %v3351_v59 = vpop.xlane.xlu0 %1448 }
 0x1cc   :  { %v3374_v24 = vpop.xlane.xlu1 %1451 }
 0x1cf   :  { %v3372_v39 = vpop.xlane.xlu0 %1454 }
 0x1d3   :  { %v3392_v63 = vpop.xlane.xlu0 %1460 }
 0x231   :  { %v2039_v8 = vpop.f32.mrb[0].mxu1  ;;  %v2095_v43 = vpop.f32.mrb[16].mxu0 }
 0x232   :  { %v665_v46 = vmul.f32 %v2368_v25, %v2039_v8  ;;  %v1011_v22 = vmul.f32 %v2386_v58, %v2095_v43  ;;  %v585_v53 = vpop.f32.mrb[1].mxu1  ;;  %v931_v23 = vpop.f32.mrb[17].mxu0  ;;  %v846_v8 = vmul.f32 1.442695, %v815_v60 }
 0x233   :  { %v664_v19 = vmul.f32 %v3341_v13, %v585_v53  ;;  %v1010_v26 = vmul.f32 %v2388_v50, %v931_v23  ;;  %v3394_v25 = vpop.xlane.xlu1 %1457  ;;  %v3400_v58 = vpop.eup %2397  ;;  %v844_v50 = vmul.f32 1.442695, %v814_v62 }
 0x234   :  { %v3390_v57 = vadd.f32 %v1011_v22, %v665_v46  ;;  %v3404_v43 = vpop.eup %2399  ;;  %v1164_v46 = vmul.f32 1.442695, %v1147_v14  ;;  %v1148_v22 = vmul.f32 -0.5, %v3311_v2  ;;  %2421 = vpow2.f32 %v846_v8 }
 0x235   :  { %v3397_v44 = vadd.f32 %v1010_v26, %v664_v19  ;;  %v2042_v13 = vpop.f32.mrb[2].mxu1  ;;  %v2098_v56 = vpop.f32.mrb[18].mxu0  ;;  %2423 = vpow2.f32 %v844_v50  ;;  %v1168_v2 = vmul.f32 1.442695, %v1149_v51 }
 0x236   :  { %v667_v0 = vmul.f32 %v3347_v52, %v2042_v13  ;;  %v1013_v40 = vmul.f32 %v2394_v55, %v2098_v56  ;;  %v595_v33 = vpop.f32.mrb[3].mxu1  ;;  %v941_v42 = vpop.f32.mrb[19].mxu0  ;;  %v1162_v55 = vmul.f32 1.442695, %v1146_v41  ;;  %v1150_v13 = vmul.f32 -0.5, %v3315_v6 }
 0x237   :  { %v666_v11 = vmul.f32 %v3344_v20, %v595_v33  ;;  %v1012_v18 = vmul.f32 %v2396_v10, %v941_v42  ;;  %v2402_v52 = vpop.eup %2401  ;;  %v1151_v20 = vmul.f32 -0.5, %v3313_v4  ;;  %v3418_v10 = vpop.xlane.xlu0 %1466  ;;  %2425 = vpow2.f32 %v1164_v46 }
 0x238   :  { %v3407_v15 = vadd.f32 %v1013_v40, %v667_v0  ;;  %v2404_v60 = vpop.eup %2403  ;;  %v3420_v4 = vpop.xlane.xlu1 %1463  ;;  %v1166_v47 = vmul.f32 1.442695, %v1148_v22  ;;  %v1153_v0 = vmul.f32 -0.5, %v3317_v31  ;;  %v1152_v41 = vmul.f32 -0.5, %v3319_v7 }
 0x239   :  { %v3410_v53 = vadd.f32 %v1012_v18, %v666_v11  ;;  %v2045_v23 = vpop.f32.mrb[4].mxu1  ;;  %v2101_v1 = vpop.f32.mrb[20].mxu0  ;;  %v1172_v8 = vmul.f32 1.442695, %v1151_v20  ;;  %2427 = vpow2.f32 %v1162_v55  ;;  %v1493_v31 = vmul.f32 -0.5, %v3351_v59 }
 0x23a   :  { %v669_v19 = vmul.f32 %v3355_v37, %v2045_v23  ;;  %v1015_v26 = vmul.f32 %v2402_v52, %v2101_v1  ;;  %v605_v61 = vpop.f32.mrb[5].mxu1  ;;  %v951_v17 = vpop.f32.mrb[21].mxu0  ;;  %2429 = vpow2.f32 %v1168_v2  ;;  %v1170_v23 = vmul.f32 1.442695, %v1150_v13 }
 0x23b   :  { %v2406_v62 = vpop.eup %2405  ;;  %v668_v5 = vmul.f32 %v3358_v28, %v605_v61  ;;  %v1014_v14 = vmul.f32 %v2404_v60, %v951_v17  ;;  %v1492_v60 = vmul.f32 -0.5, %v3353_v49  ;;  %2431 = vpow2.f32 %v1166_v47 }
 0x23c   :  { %v3416_v56 = vadd.f32 %v1015_v26, %v669_v19  ;;  %v2408_v37 = vpop.eup %2407  ;;  %v1176_v7 = vmul.f32 1.442695, %v1153_v0  ;;  %2433 = vpow2.f32 %v1172_v8  ;;  %v1510_v2 = vmul.f32 1.442695, %v1493_v31 }
 0x23d   :  { %v3423_v40 = vadd.f32 %v1014_v14, %v668_v5  ;;  %v2048_v33 = vpop.f32.mrb[6].mxu1  ;;  %v2104_v28 = vpop.f32.mrb[22].mxu0  ;;  %v1495_v13 = vmul.f32 -0.5, %v3372_v39  ;;  %2435 = vpow2.f32 %v1170_v23  ;;  %v1508_v47 = vmul.f32 1.442695, %v1492_v60 }
 0x23e   :  { %v2410_v42 = vpop.eup %2409  ;;  %v671_v6 = vmul.f32 %v3360_v9, %v2048_v33  ;;  %v1017_v11 = vmul.f32 %v2406_v62, %v2104_v28  ;;  %v615_v18 = vpop.f32.mrb[7].mxu1  ;;  %v1155_v9 = vmul.f32 -0.5, %v3321_v12  ;;  %v1494_v0 = vmul.f32 -0.5, %v3374_v24 }
 0x23f   :  { %v961_v50 = vpop.f32.mrb[23].mxu0  ;;  %v2412_v51 = vpop.eup %2411  ;;  %v670_v52 = vmul.f32 %v3363_v32, %v615_v18  ;;  %v1174_v32 = vmul.f32 1.442695, %v1152_v41  ;;  %2437 = vpow2.f32 %v1176_v7  ;;  %v1496_v7 = vmul.f32 -0.5, %v3394_v25 }
 0x240   :  { %v1016_v46 = vmul.f32 %v2408_v37, %v961_v50  ;;  %v2414_v22 = vpop.eup %2413  ;;  %v3429_v1 = vadd.f32 %v1017_v11, %v671_v6  ;;  %v3441_v33 = vpop.xlane.xlu0 %1472  ;;  %v1512_v60 = vmul.f32 1.442695, %v1494_v0 }
 0x241   :  { %v2051_v19 = vpop.f32.mrb[8].mxu1  ;;  %v2107_v26 = vpop.f32.mrb[24].mxu0  ;;  %2439 = vpow2.f32 %v1174_v32 }
 0x242   :  { %v3433_v20 = vadd.f32 %v1016_v46, %v670_v52  ;;  %v2416_v61 = vpop.eup %2415  ;;  %v673_v59 = vmul.f32 %v3366_v38, %v2051_v19  ;;  %v1019_v17 = vmul.f32 %v2410_v42, %v2107_v26  ;;  %v625_v62 = vpop.f32.mrb[9].mxu1  ;;  %v1180_v42 = vmul.f32 1.442695, %v1155_v9 }
 0x243   :  { %v971_v55 = vpop.f32.mrb[25].mxu0  ;;  %v2418_v5 = vpop.eup %2417  ;;  %v672_v14 = vmul.f32 %v3369_v21, %v625_v62  ;;  %v1154_v21 = vmul.f32 -0.5, %v3323_v29  ;;  %2441 = vpow2.f32 %v1510_v2  ;;  %v1514_v29 = vmul.f32 1.442695, %v1495_v13 }
 0x244   :  { %v1018_v49 = vmul.f32 %v2412_v51, %v971_v55  ;;  %v2420_v12 = vpop.eup %2419  ;;  %v3438_v37 = vadd.f32 %v1019_v17, %v673_v59  ;;  %v3443_v38 = vpop.xlane.xlu1 %1469  ;;  %v1497_v51 = vmul.f32 -0.5, %v3392_v63  ;;  %2443 = vpow2.f32 %v1508_v47 }
 0x245   :  { %v2422_v28 = vpop.eup %2421  ;;  %v2054_v41 = vpop.f32.mrb[10].mxu1  ;;  %2445 = vpow2.f32 %v1180_v42 }
 0x246   :  { %v3446_v8 = vadd.f32 %v1018_v49, %v672_v14  ;;  %v2110_v39 = vpop.f32.mrb[26].mxu0  ;;  %v2424_v6 = vpop.eup %2423  ;;  %v675_v11 = vmul.f32 %v3376_v35, %v2054_v41  ;;  %v1178_v35 = vmul.f32 1.442695, %v1154_v21  ;;  %v1518_v25 = vmul.f32 1.442695, %v1497_v51 }
 0x247   :  { %v1021_v18 = vmul.f32 %v2414_v22, %v2110_v39  ;;  %v635_v50 = vpop.f32.mrb[11].mxu1  ;;  %v981_v24 = vpop.f32.mrb[27].mxu0  ;;  %v1157_v22 = vmul.f32 -0.5, %v3325_v48  ;;  %2447 = vpow2.f32 %v1514_v29  ;;  %v1499_v49 = vmul.f32 -0.5, %v3418_v10 }
 0x248   :  { %v3450_v52 = vpop.eup %2425  ;;  %v674_v46 = vmul.f32 %v3378_v30, %v635_v50  ;;  %v1020_v31 = vmul.f32 %v2416_v61, %v981_v24  ;;  %v1156_v30 = vmul.f32 -0.5, %v3327_v16  ;;  %v1479_v2 = vpop.xlane.xlu0 %1478  ;;  %2449 = vpow2.f32 %v1512_v60 }
 0x249   :  { %v3453_v23 = vadd.f32 %v1021_v18, %v675_v11  ;;  %v3456_v9 = vpop.eup %2427  ;;  %v2057_v19 = vpop.f32.mrb[12].mxu1  ;;  %v1516_v16 = vmul.f32 1.442695, %v1496_v7  ;;  %2451 = vpow2.f32 %v1178_v35  ;;  %v1184_v0 = vmul.f32 1.442695, %v1157_v22 }
 0x24a   :  { %v3459_v63 = vadd.f32 %v1020_v31, %v674_v46  ;;  %v2113_v26 = vpop.f32.mrb[28].mxu0  ;;  %v3461_v32 = vpop.eup %2429  ;;  %v677_v61 = vmul.f32 %v3383_v54, %v2057_v19  ;;  %v1498_v54 = vmul.f32 -0.5, %v3420_v4  ;;  %2453 = vpow2.f32 %v1518_v25 }
 0x24b   :  { %v1023_v59 = vmul.f32 %v2418_v5, %v2113_v26  ;;  %v645_v17 = vpop.f32.mrb[13].mxu1  ;;  %v991_v62 = vpop.f32.mrb[29].mxu0  ;;  %v1522_v51 = vmul.f32 1.442695, %v1499_v49  ;;  %v1501_v46 = vmul.f32 -0.5, %v3441_v33  ;;  %2455 = vpow2.f32 %v1516_v16 }
 0x24c   :  { %v3465_v55 = vpop.eup %2431  ;;  %v676_v14 = vmul.f32 %v3387_v3, %v645_v17  ;;  %v1022_v48 = vmul.f32 %v2420_v12, %v991_v62  ;;  %v1476_v5 = vpop.xlane.xlu1 %1475  ;;  %v1182_v12 = vmul.f32 1.442695, %v1156_v30  ;;  %v1520_v60 = vmul.f32 1.442695, %v1498_v54 }
 0x24d   :  { %v3469_v13 = vpop.eup %2433  ;;  %v3471_v47 = vadd.f32 %v1023_v59, %v677_v61  ;;  %v2060_v21 = vpop.f32.mrb[14].mxu1  ;;  %v1500_v7 = vmul.f32 -0.5, %v3443_v38  ;;  %2457 = vpow2.f32 %v1184_v0  ;;  %v1158_v33 = vmul.f32 -0.5, %v3331_v27 }
 0x24e   :  { %v3474_v42 = vadd.f32 %v1022_v48, %v676_v14  ;;  %v2116_v41 = vpop.f32.mrb[30].mxu0  ;;  %v3476_v3 = vpop.eup %2435  ;;  %v679_v10 = vmul.f32 %v3400_v58, %v2060_v21  ;;  %2459 = vpow2.f32 %v1182_v12  ;;  %v1502_v59 = vmul.f32 -0.5, %v1476_v5 }
 0x24f   :  { %v1025_v39 = vmul.f32 %v2422_v28, %v2116_v41  ;;  %v655_v11 = vpop.f32.mrb[15].mxu1  ;;  %v1001_v18 = vpop.f32.mrb[31].mxu0  ;;  %v1159_v28 = vmul.f32 -0.5, %v3329_v36  ;;  %2461 = vpow2.f32 %v1522_v51  ;;  %v1526_v62 = vmul.f32 1.442695, %v1501_v46 }
 0x250   :  { %v3479_v50 = vpop.eup %2437  ;;  %v678_v4 = vmul.f32 %v3404_v43, %v655_v11  ;;  %v1024_v24 = vmul.f32 %v2424_v6, %v1001_v18  ;;  %v1503_v43 = vmul.f32 -0.5, %v1479_v2  ;;  %v1485_v6 = vpop.xlane.xlu0 %1484  ;;  %2463 = vpow2.f32 %v1520_v60 }
 0x251   :  { %v3483_v31 = vpop.eup %2439  ;;  %v3485_v29 = vadd.f32 %v1025_v39, %v679_v10  ;;  %v2151_v22 = vpop.f32.mrb[16].mxu1  ;;  %v1524_v49 = vmul.f32 1.442695, %v1500_v7  ;;  %v1188_v27 = vmul.f32 1.442695, %v1159_v28  ;;  %2465 = vpow2.f32 %v1526_v62 }
 0x252   :  { %v2442_v58 = vpop.eup %2441  ;;  %v3489_v35 = vadd.f32 %v1024_v24, %v678_v4  ;;  %v1357_v26 = vmul.f32 %v3450_v52, %v2151_v22  ;;  %v2207_v30 = vpop.f32.mrb[32].mxu0  ;;  %v1530_v5 = vmul.f32 1.442695, %v1503_v43  ;;  %v1186_v21 = vmul.f32 1.442695, %v1158_v33 }
 0x253   :  { %v2444_v19 = vpop.eup %2443  ;;  %v1277_v61 = vpop.f32.mrb[17].mxu1  ;;  %v1703_v48 = vmul.f32 %v2442_v58, %v2207_v30  ;;  %v1528_v39 = vmul.f32 1.442695, %v1502_v59  ;;  %v1505_v24 = vmul.f32 -0.5, %v1485_v6  ;;  %2467 = vpow2.f32 %v1524_v49 }
 0x254   :  { %v3493_v17 = vpop.eup %2445  ;;  %v1356_v38 = vmul.f32 %v3456_v9, %v1277_v61  ;;  %v1623_v36 = vpop.f32.mrb[33].mxu0  ;;  %v1373_v14 = vadd.f32 %v1357_v26, %v3390_v57  ;;  %v1161_v7 = vmul.f32 -0.5, %v3335_v34  ;;  %2469 = vpow2.f32 %v1530_v5 }
 0x255   :  { %v1482_v25 = vpop.xlane.xlu1 %1481  ;;  %v2448_v2 = vpop.eup %2447  ;;  %v1702_v16 = vmul.f32 %v2444_v19, %v1623_v36  ;;  %v1160_v6 = vmul.f32 -0.5, %v3337_v45  ;;  %2471 = vpow2.f32 %v1528_v39 }
 0x256   :  { %v1372_v52 = vadd.f32 %v1356_v38, %v3397_v44  ;;  %v2154_v54 = vpop.f32.mrb[18].mxu1  ;;  %v2450_v0 = vpop.eup %2449  ;;  %v1719_v41 = vadd.f32 %v1703_v48, %v1373_v14  ;;  %v1504_v46 = vmul.f32 -0.5, %v1482_v25  ;;  %2473 = vpow2.f32 %v1188_v27 }
 0x257   :  { %v1359_v9 = vmul.f32 %v3461_v32, %v2154_v54  ;;  %v2210_v12 = vpop.f32.mrb[34].mxu0  ;;  %v1287_v10 = vpop.f32.mrb[19].mxu1  ;;  %v1192_v48 = vmul.f32 1.442695, %v1161_v7  ;;  %2475 = vpow2.f32 %v1186_v21 }
 0x258   :  { %v3499_v11 = vpop.eup %2451  ;;  %v1718_v57 = vadd.f32 %v1702_v16, %v1372_v52  ;;  %v1358_v18 = vmul.f32 %v3465_v55, %v1287_v10  ;;  %v1633_v4 = vpop.f32.mrb[35].mxu0  ;;  %1735 = vst [vmem:[%s3581_s6 + $0x8] sm:$0xff] %v1719_v41  ;;  %v1705_v32 = vmul.f32 %v2448_v2, %v2210_v12  ;;  %v1532_v25 = vmul.f32 1.442695, %v1504_v46 }
 0x259   :  { %v2454_v44 = vpop.eup %2453  ;;  %v1375_v51 = vadd.f32 %v1359_v9, %v3407_v15  ;;  %v1491_v60 = vpop.xlane.xlu0 %1490  ;;  %v1704_v58 = vmul.f32 %v2450_v0, %v1633_v4  ;;  %v1190_v16 = vmul.f32 1.442695, %v1160_v6 }
 0x25a   :  { %1734 = vst [vmem:[%s3581_s6] sm:$0xff] %v1718_v57  ;;  %v1374_v55 = vadd.f32 %v1358_v18, %v3410_v53  ;;  %v2157_v28 = vpop.f32.mrb[20].mxu1  ;;  %v1488_v22 = vpop.xlane.xlu1 %1487  ;;  %v1534_v53 = vmul.f32 1.442695, %v1505_v24  ;;  %v1507_v38 = vmul.f32 -0.5, %v1491_v60 }
 0x25b   :  { %v2456_v43 = vpop.eup %2455  ;;  %v1721_v19 = vadd.f32 %v1705_v32, %v1375_v51  ;;  %v1361_v15 = vmul.f32 %v3469_v13, %v2157_v28  ;;  %v2213_v33 = vpop.f32.mrb[36].mxu0  ;;  %v1506_v13 = vmul.f32 -0.5, %v1488_v22 }
 0x25c   :  { %v1297_v26 = vpop.f32.mrb[21].mxu1  ;;  %v3513_v34 = vpop.eup %2457  ;;  %v1720_v30 = vadd.f32 %v1704_v58, %v1374_v55  ;;  %v1707_v62 = vmul.f32 %v2454_v44, %v2213_v33  ;;  %2477 = vpow2.f32 %v1534_v53  ;;  %v1538_v12 = vmul.f32 1.442695, %v1507_v38 }
 0x25d   :  { %v1360_v61 = vmul.f32 %v3476_v3, %v1297_v26  ;;  %v1643_v59 = vpop.f32.mrb[37].mxu0  ;;  %v2460_v36 = vpop.eup %2459  ;;  %1737 = vst [vmem:[%s3581_s6 + $0x18] sm:$0xff] %v1721_v19  ;;  %v1377_v45 = vadd.f32 %v1361_v15, %v3416_v56  ;;  %2479 = vpow2.f32 %v1532_v25  ;;  %v1536_v10 = vmul.f32 1.442695, %v1506_v13 }
 0x25e   :  { %v2462_v14 = vpop.eup %2461  ;;  %1736 = vst [vmem:[%s3581_s6 + $0x10] sm:$0xff] %v1720_v30  ;;  %v1706_v49 = vmul.f32 %v2456_v43, %v1643_v59  ;;  %v2160_v2 = vpop.f32.mrb[22].mxu1  ;;  %2481 = vpow2.f32 %v1192_v48 }
 0x25f   :  { %v1376_v3 = vadd.f32 %v1360_v61, %v3423_v40  ;;  %v2464_v52 = vpop.eup %2463  ;;  %v1723_v54 = vadd.f32 %v1707_v62, %v1377_v45  ;;  %v1363_v56 = vmul.f32 %v3479_v50, %v2160_v2  ;;  %v2216_v5 = vpop.f32.mrb[38].mxu0  ;;  %2483 = vpow2.f32 %v1190_v16 }
 0x260   :  { %v1307_v0 = vpop.f32.mrb[23].mxu1  ;;  %v1653_v9 = vpop.f32.mrb[39].mxu0  ;;  %v1709_v21 = vmul.f32 %v2462_v14, %v2216_v5  ;;  %2485 = vpow2.f32 %v1538_v12 }
 0x261   :  { %v1722_v41 = vadd.f32 %v1706_v49, %v1376_v3  ;;  %v1362_v27 = vmul.f32 %v3483_v31, %v1307_v0  ;;  %1739 = vst [vmem:[%s3581_s6 + $0x28] sm:$0xff] %v1723_v54  ;;  %v1379_v40 = vadd.f32 %v1363_v56, %v3429_v1  ;;  %v2466_v39 = vpop.eup %2465  ;;  %v1708_v31 = vmul.f32 %v2464_v52, %v1653_v9  ;;  %v2163_v57 = vpop.f32.mrb[24].mxu1 }
 0x262   :  { %v2468_v18 = vpop.eup %2467  ;;  %v1365_v24 = vmul.f32 %v3493_v17, %v2163_v57  ;;  %v2219_v44 = vpop.f32.mrb[40].mxu0  ;;  %2487 = vpow2.f32 %v1536_v10 }
 0x263   :  { %1738 = vst [vmem:[%s3581_s6 + $0x20] sm:$0xff] %v1722_v41  ;;  %v1378_v50 = vadd.f32 %v1362_v27, %v3433_v20  ;;  %v1725_v4 = vadd.f32 %v1709_v21, %v1379_v40  ;;  %v1317_v51 = vpop.f32.mrb[25].mxu1  ;;  %v2470_v1 = vpop.eup %2469  ;;  %v1711_v55 = vmul.f32 %v2466_v39, %v2219_v44 }
 0x264   :  { %v1364_v46 = vmul.f32 %v3499_v11, %v1317_v51  ;;  %v1663_v60 = vpop.f32.mrb[41].mxu0  ;;  %v2472_v7 = vpop.eup %2471  ;;  %v1381_v20 = vadd.f32 %v1365_v24, %v3438_v37 }
 0x265   :  { %v1724_v32 = vadd.f32 %v1708_v31, %v1378_v50  ;;  %1741 = vst [vmem:[%s3581_s6 + $0x38] sm:$0xff] %v1725_v4  ;;  %v1710_v58 = vmul.f32 %v2468_v18, %v1663_v60  ;;  %v2166_v28 = vpop.f32.mrb[26].mxu1  ;;  %v2474_v19 = vpop.eup %2473 }
 0x266   :  { %v1380_v17 = vadd.f32 %v1364_v46, %v3446_v8  ;;  %v1727_v22 = vadd.f32 %v1711_v55, %v1381_v20  ;;  %v1367_v11 = vmul.f32 %v3513_v34, %v2166_v28  ;;  %v2222_v43 = vpop.f32.mrb[42].mxu0  ;;  %v1327_v6 = vpop.f32.mrb[27].mxu1 }
 0x267   :  { %1740 = vst [vmem:[%s3581_s6 + $0x30] sm:$0xff] %v1724_v32  ;;  %v1366_v33 = vmul.f32 %v2460_v36, %v1327_v6  ;;  %v1673_v26 = vpop.f32.mrb[43].mxu0  ;;  %v2476_v30 = vpop.eup %2475  ;;  %v1713_v61 = vmul.f32 %v2470_v1, %v2222_v43 }
 0x268   :  { %v1726_v15 = vadd.f32 %v1710_v58, %v1380_v17  ;;  %1743 = vst [vmem:[%s3581_s6 + $0x48] sm:$0xff] %v1727_v22  ;;  %v1383_v37 = vadd.f32 %v1367_v11, %v3453_v23  ;;  %v2478_v8 = vpop.eup %2477  ;;  %v1712_v59 = vmul.f32 %v2472_v7, %v1673_v26 }
 0x269   :  { %v1382_v34 = vadd.f32 %v1366_v33, %v3459_v63  ;;  %v2169_v53 = vpop.f32.mrb[28].mxu1  ;;  %v2480_v38 = vpop.eup %2479 }
 0x26a   :  { %1742 = vst [vmem:[%s3581_s6 + $0x40] sm:$0xff] %v1726_v15  ;;  %v1729_v36 = vadd.f32 %v1713_v61, %v1383_v37  ;;  %v1369_v45 = vmul.f32 %v2474_v19, %v2169_v53  ;;  %v2225_v62 = vpop.f32.mrb[44].mxu0  ;;  %v1337_v25 = vpop.f32.mrb[29].mxu1 }
 0x26b   :  { %v2482_v13 = vpop.eup %2481  ;;  %v1728_v14 = vadd.f32 %v1712_v59, %v1382_v34  ;;  %v1368_v48 = vmul.f32 %v2476_v30, %v1337_v25  ;;  %v1683_v3 = vpop.f32.mrb[45].mxu0  ;;  %v1715_v2 = vmul.f32 %v2478_v8, %v2225_v62 }
 0x26c   :  { %v2484_v23 = vpop.eup %2483  ;;  %1745 = vst [vmem:[%s3581_s6 + $0x58] sm:$0xff] %v1729_v36  ;;  %v1385_v49 = vadd.f32 %v1369_v45, %v3471_v47  ;;  %v1714_v16 = vmul.f32 %v2480_v38, %v1683_v3 }
 0x26d   :  { %v2486_v63 = vpop.eup %2485  ;;  %1744 = vst [vmem:[%s3581_s6 + $0x50] sm:$0xff] %v1728_v14  ;;  %v1384_v52 = vadd.f32 %v1368_v48, %v3474_v42  ;;  %v2172_v54 = vpop.f32.mrb[30].mxu1 }
 0x26e   :  { %v2488_v56 = vpop.eup %2487  ;;  %v1731_v5 = vadd.f32 %v1715_v2, %v1385_v49  ;;  %v1371_v0 = vmul.f32 %v2482_v13, %v2172_v54  ;;  %v2228_v41 = vpop.f32.mrb[46].mxu0 }
 0x26f   :  { %v1347_v27 = vpop.f32.mrb[31].mxu1  ;;  %v1730_v9 = vadd.f32 %v1714_v16, %v1384_v52  ;;  %v1693_v40 = vpop.f32.mrb[47].mxu0  ;;  %v1717_v21 = vmul.f32 %v2486_v63, %v2228_v41 }
 0x270   :  { %v1370_v12 = vmul.f32 %v2484_v23, %v1347_v27  ;;  %1747 = vst [vmem:[%s3581_s6 + $0x68] sm:$0xff] %v1731_v5  ;;  %v1387_v47 = vadd.f32 %v1371_v0, %v3485_v29  ;;  %v1716_v10 = vmul.f32 %v2488_v56, %v1693_v40 }
 0x271   :  { %1746 = vst [vmem:[%s3581_s6 + $0x60] sm:$0xff] %v1730_v9 }
 0x272   :  { %v1386_v42 = vadd.f32 %v1370_v12, %v3489_v35  ;;  %v1733_v39 = vadd.f32 %v1717_v21, %v1387_v47 }
 0x274   :  { %v1732_v50 = vadd.f32 %v1716_v10, %v1386_v42  ;;  %1749 = vst [vmem:[%s3581_s6 + $0x78] sm:$0xff] %v1733_v39 }
 0x276   :  { %1748 = vst [vmem:[%s3581_s6 + $0x70] sm:$0xff] %v1732_v50 }

</bundles_post_ra>
